<compile_context>
chip_gen: v5e
topology: v5e:2x2
jax: 0.10.0
libtpu: 0.0.40
codegen_flags: <defaults>
</compile_context>

<pallas_src>
import jax
import jax.numpy as jnp
import numpy as np
from jax import lax
from jax.experimental import pallas as pl
from jax.experimental.pallas import tpu as pltpu


# ------------------------------ Pallas kernel -------------------------------

def _lenet_kernel(x1_ref, w1t_ref, b1t_ref, w2t_ref, b2t_ref,
                  w1fc_ref, b1fc_ref, w2fc_ref, b2fc_ref, w3fc_ref, b3fc_ref,
                  out_ref):
    """Whole LeNet forward in one kernel.

    x1_ref  : [B*14, 192]  conv1 Toeplitz activations, x1[b*14+u, t*32+j] = x[b, 2u+t, j]
    w1t_ref : [192, 336]   conv1 block-Toeplitz weight, cols = (pool phase, v1, c)
    b1t_ref : [1, 84]      conv1 bias tiled over the 14 pooled columns
    w2t_ref : [420, 160]   conv2 block-Toeplitz weight, rows = (kh, v1, c), cols = (s2, o)
    b2t_ref : [1, 400]     conv2 bias tiled over the 25 pooled positions
    w1fc_ref: [400, 120]   fc1 weight, rows pre-permuted to (u2, v2, o)
    b1fc_ref: [1, 120];  w2fc_ref: [120, 84];  b2fc_ref: [1, 84]
    w3fc_ref: [84, 10];  b3fc_ref: [1, 10]
    out_ref : [B, 10]
    """
    f32 = jnp.float32
    B = out_ref.shape[0]

    # ---- conv1 + ReLU + 2x2 max-pool: ONE MXU matmul + 4-block lane max -----
    z1 = jnp.dot(x1_ref[...], w1t_ref[...], preferred_element_type=f32)   # [B*14, 336]
    p1 = jnp.maximum(jnp.maximum(z1[:, 0:84], z1[:, 84:168]),
                     jnp.maximum(z1[:, 168:252], z1[:, 252:336]))         # [B*14, 84]
    # p1[b*14 + u1, v1*6 + c] = maxpool(relu(conv1))[b, c, u1, v1]
    p1 = jnp.maximum(p1 + b1t_ref[...], 0.0)

    # ---- conv2 input: 5 row-shifted copies of p1 concatenated along lanes ----
    shifted = []
    for kh in range(5):
        rows = jnp.concatenate(
            [p1[b * 14 + kh: b * 14 + kh + 10, :] for b in range(B)], axis=0)   # [B*10, 84]
        shifted.append(rows)
    x2 = jnp.concatenate(shifted, axis=1)                                  # [B*10, 420]

    # ---- conv2: ONE MXU matmul ----------------------------------------------
    z2 = jnp.dot(x2, w2t_ref[...], preferred_element_type=f32)             # [B*10, 160]
    # z2[b*10 + r2, s2*16 + o] = conv2 (pre-bias) at row r2, col s2, channel o

    # ---- 2x2 max-pool of conv2: column (s2) direction first ------------------
    cm = jnp.concatenate(
        [jnp.maximum(z2[:, 32 * v2: 32 * v2 + 16], z2[:, 32 * v2 + 16: 32 * v2 + 32])
         for v2 in range(5)], axis=1)                                      # [B*10, 80]

    # ---- row (r2) direction pool, emitting the flattened fc1 input directly --
    rows_flat = []
    for b in range(B):
        pieces = [jnp.maximum(cm[b * 10 + 2 * u2: b * 10 + 2 * u2 + 1, :],
                              cm[b * 10 + 2 * u2 + 1: b * 10 + 2 * u2 + 2, :])
                  for u2 in range(5)]
        rows_flat.append(jnp.concatenate(pieces, axis=1))                  # [1, 400]
    act = jnp.concatenate(rows_flat, axis=0)                               # [B, 400]
    act = jnp.maximum(act + b2t_ref[...], 0.0)   # act[b, u2*80 + v2*16 + o] = pooled2

    # ---- fc1 / fc2 / fc3: three single matmuls --------------------------------
    y = jnp.maximum(jnp.dot(act, w1fc_ref[...], preferred_element_type=f32)
                    + b1fc_ref[...], 0.0)                                  # [B, 120]
    y = jnp.maximum(jnp.dot(y, w2fc_ref[...], preferred_element_type=f32)
                    + b2fc_ref[...], 0.0)                                  # [B, 84]
    out_ref[...] = (jnp.dot(y, w3fc_ref[...], preferred_element_type=f32)
                    + b3fc_ref[...])                                       # [B, 10]


# ------------------------------ call wrapper ---------------------------------

_VMEM = pl.BlockSpec(memory_space=pltpu.MemorySpace.VMEM)


def net_forward(params, x):
    """x: [B, 1, 32, 32] NCHW float32 -> logits [B, 10]."""
    B = x.shape[0]
    xs = x[:, 0]                                                    # [B, 32, 32]
    # conv1 Toeplitz activation: x1[b*14 + u, t*32 + j] = x[b, 2u + t, j]
    x1 = jnp.concatenate([xs[:, t::2, :][:, :14, :] for t in range(6)], axis=-1)
    x1 = x1.reshape(B * 14, 6 * 32)                                 # [B*14, 192]
    return pl.pallas_call(
        _lenet_kernel,
        in_specs=[_VMEM] * 11,
        out_specs=_VMEM,
        out_shape=jax.ShapeDtypeStruct((B, 10), jnp.float32),
    )(x1, params["w1t"], params["b1t"], params["w2t"], params["b2t"],
      params["w1r"], params["bfc1"], params["wfc2t"], params["bfc2"],
      params["wfc3t"], params["bfc3"])


# ------------------------------ params ---------------------------------------

def init_params(key):
    ks = jax.random.split(key, 10)

    def nrm(k, shape, scale):
        return (scale * jax.random.normal(k, shape)).astype(jnp.float32)

    return {
        "conv1_w": nrm(ks[0], (6, 1, 5, 5), 0.20),
        "conv1_b": nrm(ks[1], (6,), 0.10),
        "conv2_w": nrm(ks[2], (16, 6, 5, 5), 0.08),
        "conv2_b": nrm(ks[3], (16,), 0.10),
        "fc1_w": nrm(ks[4], (120, 400), 0.05),   # torch Linear: [out, in]
        "fc1_b": nrm(ks[5], (120,), 0.05),
        "fc2_w": nrm(ks[6], (84, 120), 0.09),
        "fc2_b": nrm(ks[7], (84,), 0.05),
        "fc3_w": nrm(ks[8], (10, 84), 0.10),
        "fc3_b": nrm(ks[9], (10,), 0.05),
    }


def prepare_params(raw):
    """One-time weight re-layout: block-Toeplitz conv weights, permuted fc1."""
    w1 = np.asarray(raw["conv1_w"], np.float32).reshape(6, 5, 5)     # [c, kh, kw]
    b1 = np.asarray(raw["conv1_b"], np.float32)
    w2 = np.asarray(raw["conv2_w"], np.float32)                      # [o, c, kh, kw]
    b2 = np.asarray(raw["conv2_b"], np.float32)

    # conv1: row = t*32 + j, col = (p*2+q)*84 + v1*6 + c  ->  w1[c, t-p, j-2v1-q]
    w1t = np.zeros((6 * 32, 4 * 14 * 6), np.float32)
    for p in range(2):
        for q in range(2):
            for v1 in range(14):
                col = (p * 2 + q) * 84 + v1 * 6
                for kh in range(5):
                    for kw in range(5):
                        w1t[(p + kh) * 32 + 2 * v1 + q + kw, col:col + 6] = w1[:, kh, kw]

    # conv2: row = kh*84 + v1*6 + c, col = s2*16 + o  ->  w2[o, c, kh, v1-s2]
    w2t = np.zeros((5 * 84, 10 * 16), np.float32)
    for s2 in range(10):
        for kh in range(5):
            for kw in range(5):
                r0 = kh * 84 + (s2 + kw) * 6
                w2t[r0:r0 + 6, s2 * 16:s2 * 16 + 16] = w2[:, :, kh, kw].T  # [c, o]

    # fc1 rows reordered from torch flatten (o, u2, v2) to kernel order (u2, v2, o)
    w1r = np.asarray(raw["fc1_w"], np.float32).reshape(120, 16, 5, 5)
    w1r = np.transpose(w1r, (2, 3, 1, 0)).reshape(400, 120)

    return {
        "w1t": jnp.asarray(w1t),
        "b1t": jnp.asarray(np.tile(b1, 14)[None, :]),                 # [1, 84]
        "w2t": jnp.asarray(w2t),
        "b2t": jnp.asarray(np.tile(b2, 25)[None, :]),                 # [1, 400]
        "w1r": jnp.asarray(w1r),
        "bfc1": jnp.asarray(np.asarray(raw["fc1_b"], np.float32)[None, :]),
        "wfc2t": jnp.asarray(np.asarray(raw["fc2_w"], np.float32).T),
        "bfc2": jnp.asarray(np.asarray(raw["fc2_b"], np.float32)[None, :]),
        "wfc3t": jnp.asarray(np.asarray(raw["fc3_w"], np.float32).T),
        "bfc3": jnp.asarray(np.asarray(raw["fc3_b"], np.float32)[None, :]),
    }


# ------------------------------ XLA reference --------------------------------

def net_reference(raw, x):
    """Pure-XLA reference matching the PyTorch module (parity check only)."""
    z = lax.conv_general_dilated(x, raw["conv1_w"], (1, 1), "VALID",
                                 dimension_numbers=("NCHW", "OIHW", "NCHW"))
    z = jnp.maximum(z + raw["conv1_b"][None, :, None, None], 0.0)
    z = lax.reduce_window(z, -jnp.inf, lax.max, (1, 1, 2, 2), (1, 1, 2, 2), "VALID")
    z = lax.conv_general_dilated(z, raw["conv2_w"], (1, 1), "VALID",
                                 dimension_numbers=("NCHW", "OIHW", "NCHW"))
    z = jnp.maximum(z + raw["conv2_b"][None, :, None, None], 0.0)
    z = lax.reduce_window(z, -jnp.inf, lax.max, (1, 1, 2, 2), (1, 1, 2, 2), "VALID")
    z = z.reshape(z.shape[0], -1)
    z = jnp.maximum(z @ raw["fc1_w"].T + raw["fc1_b"], 0.0)
    z = jnp.maximum(z @ raw["fc2_w"].T + raw["fc2_b"], 0.0)
    return z @ raw["fc3_w"].T + raw["fc3_b"]


if __name__ == "__main__":
    x = jax.random.normal(jax.random.PRNGKey(0), (2, 1, 32, 32), dtype=jnp.float32)
    raw = init_params(jax.random.PRNGKey(42))
    params = prepare_params(raw)          # one-time re-layout, not per-forward
    fwd = jax.jit(net_forward)
    out = jax.block_until_ready(fwd(params, x))
    assert out.shape == (2, 10) and out.dtype == jnp.float32
    ref = net_reference(raw, x)
    assert float(jnp.max(jnp.abs(out - ref))) < 0.1, "parity check vs XLA reference failed"
    print("KERNEL_OK")
</pallas_src>

<mosaic_0001>
module attributes {stable_mosaic.version = 11 : i64} {
  func.func @_lenet_kernel(%arg0: memref<28x192xf32, #tpu.memory_space<vmem>>, %arg1: memref<192x336xf32, #tpu.memory_space<vmem>>, %arg2: memref<1x84xf32, #tpu.memory_space<vmem>>, %arg3: memref<420x160xf32, #tpu.memory_space<vmem>>, %arg4: memref<1x400xf32, #tpu.memory_space<vmem>>, %arg5: memref<400x120xf32, #tpu.memory_space<vmem>>, %arg6: memref<1x120xf32, #tpu.memory_space<vmem>>, %arg7: memref<120x84xf32, #tpu.memory_space<vmem>>, %arg8: memref<1x84xf32, #tpu.memory_space<vmem>>, %arg9: memref<84x10xf32, #tpu.memory_space<vmem>>, %arg10: memref<1x10xf32, #tpu.memory_space<vmem>>, %arg11: memref<2x10xf32, #tpu.memory_space<vmem>>) attributes {dimension_semantics = [], scalar_prefetch = 0 : i64, scratch_operands = 0 : i64, tpu.core_type = #tpu.core_type<tc>} {
    %c0 = arith.constant 0 : index
    %c0_0 = arith.constant 0 : index
    %0 = vector.load %arg0[%c0, %c0_0] : memref<28x192xf32, #tpu.memory_space<vmem>>, vector<28x192xf32>
    %c0_1 = arith.constant 0 : index
    %c0_2 = arith.constant 0 : index
    %1 = vector.load %arg1[%c0_1, %c0_2] : memref<192x336xf32, #tpu.memory_space<vmem>>, vector<192x336xf32>
    %cst = arith.constant dense<0.000000e+00> : vector<28x336xf32>
    %2 = tpu.matmul %0, %1, %cst {dimension_numbers = #tpu.dot_dimension_numbers<[1], [0], [0], [1], [0, 0, 1, 1], [], []>} : vector<28x192xf32>, vector<192x336xf32>, vector<28x336xf32> -> vector<28x336xf32>
    %3 = vector.extract_strided_slice %2 {offsets = [0, 0], sizes = [28, 84], strides = [1, 1]} : vector<28x336xf32> to vector<28x84xf32>
    %4 = vector.extract_strided_slice %2 {offsets = [0, 84], sizes = [28, 84], strides = [1, 1]} : vector<28x336xf32> to vector<28x84xf32>
    %5 = arith.maximumf %3, %4 : vector<28x84xf32>
    %6 = vector.extract_strided_slice %2 {offsets = [0, 168], sizes = [28, 84], strides = [1, 1]} : vector<28x336xf32> to vector<28x84xf32>
    %7 = vector.extract_strided_slice %2 {offsets = [0, 252], sizes = [28, 84], strides = [1, 1]} : vector<28x336xf32> to vector<28x84xf32>
    %8 = arith.maximumf %6, %7 : vector<28x84xf32>
    %9 = arith.maximumf %5, %8 : vector<28x84xf32>
    %c0_3 = arith.constant 0 : index
    %c0_4 = arith.constant 0 : index
    %10 = vector.load %arg2[%c0_3, %c0_4] : memref<1x84xf32, #tpu.memory_space<vmem>>, vector<1x84xf32>
    %11 = vector.broadcast %10 : vector<1x84xf32> to vector<28x84xf32>
    %12 = arith.addf %9, %11 : vector<28x84xf32>
    %cst_5 = arith.constant 0.000000e+00 : f32
    %13 = vector.broadcast %cst_5 : f32 to vector<28x84xf32>
    %14 = arith.maximumf %12, %13 : vector<28x84xf32>
    %15 = vector.extract_strided_slice %14 {offsets = [0, 0], sizes = [10, 84], strides = [1, 1]} : vector<28x84xf32> to vector<10x84xf32>
    %16 = vector.extract_strided_slice %14 {offsets = [14, 0], sizes = [10, 84], strides = [1, 1]} : vector<28x84xf32> to vector<10x84xf32>
    %17 = tpu.concatenate %15, %16 in 0 : vector<10x84xf32>, vector<10x84xf32> -> vector<20x84xf32>
    %18 = vector.extract_strided_slice %14 {offsets = [1, 0], sizes = [10, 84], strides = [1, 1]} : vector<28x84xf32> to vector<10x84xf32>
    %19 = vector.extract_strided_slice %14 {offsets = [15, 0], sizes = [10, 84], strides = [1, 1]} : vector<28x84xf32> to vector<10x84xf32>
    %20 = tpu.concatenate %18, %19 in 0 : vector<10x84xf32>, vector<10x84xf32> -> vector<20x84xf32>
    %21 = vector.extract_strided_slice %14 {offsets = [2, 0], sizes = [10, 84], strides = [1, 1]} : vector<28x84xf32> to vector<10x84xf32>
    %22 = vector.extract_strided_slice %14 {offsets = [16, 0], sizes = [10, 84], strides = [1, 1]} : vector<28x84xf32> to vector<10x84xf32>
    %23 = tpu.concatenate %21, %22 in 0 : vector<10x84xf32>, vector<10x84xf32> -> vector<20x84xf32>
    %24 = vector.extract_strided_slice %14 {offsets = [3, 0], sizes = [10, 84], strides = [1, 1]} : vector<28x84xf32> to vector<10x84xf32>
    %25 = vector.extract_strided_slice %14 {offsets = [17, 0], sizes = [10, 84], strides = [1, 1]} : vector<28x84xf32> to vector<10x84xf32>
    %26 = tpu.concatenate %24, %25 in 0 : vector<10x84xf32>, vector<10x84xf32> -> vector<20x84xf32>
    %27 = vector.extract_strided_slice %14 {offsets = [4, 0], sizes = [10, 84], strides = [1, 1]} : vector<28x84xf32> to vector<10x84xf32>
    %28 = vector.extract_strided_slice %14 {offsets = [18, 0], sizes = [10, 84], strides = [1, 1]} : vector<28x84xf32> to vector<10x84xf32>
    %29 = tpu.concatenate %27, %28 in 0 : vector<10x84xf32>, vector<10x84xf32> -> vector<20x84xf32>
    %30 = tpu.concatenate %17, %20, %23, %26, %29 in 1 : vector<20x84xf32>, vector<20x84xf32>, vector<20x84xf32>, vector<20x84xf32>, vector<20x84xf32> -> vector<20x420xf32>
    %c0_6 = arith.constant 0 : index
    %c0_7 = arith.constant 0 : index
    %31 = vector.load %arg3[%c0_6, %c0_7] : memref<420x160xf32, #tpu.memory_space<vmem>>, vector<420x160xf32>
    %cst_8 = arith.constant dense<0.000000e+00> : vector<20x160xf32>
    %32 = tpu.matmul %30, %31, %cst_8 {dimension_numbers = #tpu.dot_dimension_numbers<[1], [0], [0], [1], [0, 0, 1, 1], [], []>} : vector<20x420xf32>, vector<420x160xf32>, vector<20x160xf32> -> vector<20x160xf32>
    %33 = vector.extract_strided_slice %32 {offsets = [0, 0], sizes = [20, 16], strides = [1, 1]} : vector<20x160xf32> to vector<20x16xf32>
    %34 = vector.extract_strided_slice %32 {offsets = [0, 16], sizes = [20, 16], strides = [1, 1]} : vector<20x160xf32> to vector<20x16xf32>
    %35 = arith.maximumf %33, %34 : vector<20x16xf32>
    %36 = vector.extract_strided_slice %32 {offsets = [0, 32], sizes = [20, 16], strides = [1, 1]} : vector<20x160xf32> to vector<20x16xf32>
    %37 = vector.extract_strided_slice %32 {offsets = [0, 48], sizes = [20, 16], strides = [1, 1]} : vector<20x160xf32> to vector<20x16xf32>
    %38 = arith.maximumf %36, %37 : vector<20x16xf32>
    %39 = vector.extract_strided_slice %32 {offsets = [0, 64], sizes = [20, 16], strides = [1, 1]} : vector<20x160xf32> to vector<20x16xf32>
    %40 = vector.extract_strided_slice %32 {offsets = [0, 80], sizes = [20, 16], strides = [1, 1]} : vector<20x160xf32> to vector<20x16xf32>
    %41 = arith.maximumf %39, %40 : vector<20x16xf32>
    %42 = vector.extract_strided_slice %32 {offsets = [0, 96], sizes = [20, 16], strides = [1, 1]} : vector<20x160xf32> to vector<20x16xf32>
    %43 = vector.extract_strided_slice %32 {offsets = [0, 112], sizes = [20, 16], strides = [1, 1]} : vector<20x160xf32> to vector<20x16xf32>
    %44 = arith.maximumf %42, %43 : vector<20x16xf32>
    %45 = vector.extract_strided_slice %32 {offsets = [0, 128], sizes = [20, 16], strides = [1, 1]} : vector<20x160xf32> to vector<20x16xf32>
    %46 = vector.extract_strided_slice %32 {offsets = [0, 144], sizes = [20, 16], strides = [1, 1]} : vector<20x160xf32> to vector<20x16xf32>
    %47 = arith.maximumf %45, %46 : vector<20x16xf32>
    %48 = tpu.concatenate %35, %38, %41, %44, %47 in 1 : vector<20x16xf32>, vector<20x16xf32>, vector<20x16xf32>, vector<20x16xf32>, vector<20x16xf32> -> vector<20x80xf32>
    %49 = vector.extract_strided_slice %48 {offsets = [0, 0], sizes = [1, 80], strides = [1, 1]} : vector<20x80xf32> to vector<1x80xf32>
    %50 = vector.extract_strided_slice %48 {offsets = [1, 0], sizes = [1, 80], strides = [1, 1]} : vector<20x80xf32> to vector<1x80xf32>
    %51 = arith.maximumf %49, %50 : vector<1x80xf32>
    %52 = vector.extract_strided_slice %48 {offsets = [2, 0], sizes = [1, 80], strides = [1, 1]} : vector<20x80xf32> to vector<1x80xf32>
    %53 = vector.extract_strided_slice %48 {offsets = [3, 0], sizes = [1, 80], strides = [1, 1]} : vector<20x80xf32> to vector<1x80xf32>
    %54 = arith.maximumf %52, %53 : vector<1x80xf32>
    %55 = vector.extract_strided_slice %48 {offsets = [4, 0], sizes = [1, 80], strides = [1, 1]} : vector<20x80xf32> to vector<1x80xf32>
    %56 = vector.extract_strided_slice %48 {offsets = [5, 0], sizes = [1, 80], strides = [1, 1]} : vector<20x80xf32> to vector<1x80xf32>
    %57 = arith.maximumf %55, %56 : vector<1x80xf32>
    %58 = vector.extract_strided_slice %48 {offsets = [6, 0], sizes = [1, 80], strides = [1, 1]} : vector<20x80xf32> to vector<1x80xf32>
    %59 = vector.extract_strided_slice %48 {offsets = [7, 0], sizes = [1, 80], strides = [1, 1]} : vector<20x80xf32> to vector<1x80xf32>
    %60 = arith.maximumf %58, %59 : vector<1x80xf32>
    %61 = vector.extract_strided_slice %48 {offsets = [8, 0], sizes = [1, 80], strides = [1, 1]} : vector<20x80xf32> to vector<1x80xf32>
    %62 = vector.extract_strided_slice %48 {offsets = [9, 0], sizes = [1, 80], strides = [1, 1]} : vector<20x80xf32> to vector<1x80xf32>
    %63 = arith.maximumf %61, %62 : vector<1x80xf32>
    %64 = tpu.concatenate %51, %54, %57, %60, %63 in 1 : vector<1x80xf32>, vector<1x80xf32>, vector<1x80xf32>, vector<1x80xf32>, vector<1x80xf32> -> vector<1x400xf32>
    %65 = vector.extract_strided_slice %48 {offsets = [10, 0], sizes = [1, 80], strides = [1, 1]} : vector<20x80xf32> to vector<1x80xf32>
    %66 = vector.extract_strided_slice %48 {offsets = [11, 0], sizes = [1, 80], strides = [1, 1]} : vector<20x80xf32> to vector<1x80xf32>
    %67 = arith.maximumf %65, %66 : vector<1x80xf32>
    %68 = vector.extract_strided_slice %48 {offsets = [12, 0], sizes = [1, 80], strides = [1, 1]} : vector<20x80xf32> to vector<1x80xf32>
    %69 = vector.extract_strided_slice %48 {offsets = [13, 0], sizes = [1, 80], strides = [1, 1]} : vector<20x80xf32> to vector<1x80xf32>
    %70 = arith.maximumf %68, %69 : vector<1x80xf32>
    %71 = vector.extract_strided_slice %48 {offsets = [14, 0], sizes = [1, 80], strides = [1, 1]} : vector<20x80xf32> to vector<1x80xf32>
    %72 = vector.extract_strided_slice %48 {offsets = [15, 0], sizes = [1, 80], strides = [1, 1]} : vector<20x80xf32> to vector<1x80xf32>
    %73 = arith.maximumf %71, %72 : vector<1x80xf32>
    %74 = vector.extract_strided_slice %48 {offsets = [16, 0], sizes = [1, 80], strides = [1, 1]} : vector<20x80xf32> to vector<1x80xf32>
    %75 = vector.extract_strided_slice %48 {offsets = [17, 0], sizes = [1, 80], strides = [1, 1]} : vector<20x80xf32> to vector<1x80xf32>
    %76 = arith.maximumf %74, %75 : vector<1x80xf32>
    %77 = vector.extract_strided_slice %48 {offsets = [18, 0], sizes = [1, 80], strides = [1, 1]} : vector<20x80xf32> to vector<1x80xf32>
    %78 = vector.extract_strided_slice %48 {offsets = [19, 0], sizes = [1, 80], strides = [1, 1]} : vector<20x80xf32> to vector<1x80xf32>
    %79 = arith.maximumf %77, %78 : vector<1x80xf32>
    %80 = tpu.concatenate %67, %70, %73, %76, %79 in 1 : vector<1x80xf32>, vector<1x80xf32>, vector<1x80xf32>, vector<1x80xf32>, vector<1x80xf32> -> vector<1x400xf32>
    %81 = tpu.concatenate %64, %80 in 0 : vector<1x400xf32>, vector<1x400xf32> -> vector<2x400xf32>
    %c0_9 = arith.constant 0 : index
    %c0_10 = arith.constant 0 : index
    %82 = vector.load %arg4[%c0_9, %c0_10] : memref<1x400xf32, #tpu.memory_space<vmem>>, vector<1x400xf32>
    %83 = vector.broadcast %82 : vector<1x400xf32> to vector<2x400xf32>
    %84 = arith.addf %81, %83 : vector<2x400xf32>
    %cst_11 = arith.constant 0.000000e+00 : f32
    %85 = vector.broadcast %cst_11 : f32 to vector<2x400xf32>
    %86 = arith.maximumf %84, %85 : vector<2x400xf32>
    %c0_12 = arith.constant 0 : index
    %c0_13 = arith.constant 0 : index
    %87 = vector.load %arg5[%c0_12, %c0_13] : memref<400x120xf32, #tpu.memory_space<vmem>>, vector<400x120xf32>
    %cst_14 = arith.constant dense<0.000000e+00> : vector<2x120xf32>
    %88 = tpu.matmul %86, %87, %cst_14 {dimension_numbers = #tpu.dot_dimension_numbers<[1], [0], [0], [1], [0, 0, 1, 1], [], []>} : vector<2x400xf32>, vector<400x120xf32>, vector<2x120xf32> -> vector<2x120xf32>
    %c0_15 = arith.constant 0 : index
    %c0_16 = arith.constant 0 : index
    %89 = vector.load %arg6[%c0_15, %c0_16] : memref<1x120xf32, #tpu.memory_space<vmem>>, vector<1x120xf32>
    %90 = vector.broadcast %89 : vector<1x120xf32> to vector<2x120xf32>
    %91 = arith.addf %88, %90 : vector<2x120xf32>
    %cst_17 = arith.constant 0.000000e+00 : f32
    %92 = vector.broadcast %cst_17 : f32 to vector<2x120xf32>
    %93 = arith.maximumf %91, %92 : vector<2x120xf32>
    %c0_18 = arith.constant 0 : index
    %c0_19 = arith.constant 0 : index
    %94 = vector.load %arg7[%c0_18, %c0_19] : memref<120x84xf32, #tpu.memory_space<vmem>>, vector<120x84xf32>
    %cst_20 = arith.constant dense<0.000000e+00> : vector<2x84xf32>
    %95 = tpu.matmul %93, %94, %cst_20 {dimension_numbers = #tpu.dot_dimension_numbers<[1], [0], [0], [1], [0, 0, 1, 1], [], []>} : vector<2x120xf32>, vector<120x84xf32>, vector<2x84xf32> -> vector<2x84xf32>
    %c0_21 = arith.constant 0 : index
    %c0_22 = arith.constant 0 : index
    %96 = vector.load %arg8[%c0_21, %c0_22] : memref<1x84xf32, #tpu.memory_space<vmem>>, vector<1x84xf32>
    %97 = vector.broadcast %96 : vector<1x84xf32> to vector<2x84xf32>
    %98 = arith.addf %95, %97 : vector<2x84xf32>
    %cst_23 = arith.constant 0.000000e+00 : f32
    %99 = vector.broadcast %cst_23 : f32 to vector<2x84xf32>
    %100 = arith.maximumf %98, %99 : vector<2x84xf32>
    %c0_24 = arith.constant 0 : index
    %c0_25 = arith.constant 0 : index
    %101 = vector.load %arg9[%c0_24, %c0_25] : memref<84x10xf32, #tpu.memory_space<vmem>>, vector<84x10xf32>
    %cst_26 = arith.constant dense<0.000000e+00> : vector<2x10xf32>
    %102 = tpu.matmul %100, %101, %cst_26 {dimension_numbers = #tpu.dot_dimension_numbers<[1], [0], [0], [1], [0, 0, 1, 1], [], []>} : vector<2x84xf32>, vector<84x10xf32>, vector<2x10xf32> -> vector<2x10xf32>
    %c0_27 = arith.constant 0 : index
    %c0_28 = arith.constant 0 : index
    %103 = vector.load %arg10[%c0_27, %c0_28] : memref<1x10xf32, #tpu.memory_space<vmem>>, vector<1x10xf32>
    %104 = vector.broadcast %103 : vector<1x10xf32> to vector<2x10xf32>
    %105 = arith.addf %102, %104 : vector<2x10xf32>
    %c0_29 = arith.constant 0 : index
    %c0_30 = arith.constant 0 : index
    %106 = vector.load %arg11[%c0_29, %c0_30] : memref<2x10xf32, #tpu.memory_space<vmem>>, vector<2x10xf32>
    tpu.vector_store %arg11[%c0_29, %c0_30], %105 {strides = array<i32>} : memref<2x10xf32, #tpu.memory_space<vmem>>, vector<2x10xf32>,
    return
  }
}

</mosaic_0001>

<bundles_post_ra>
// kernel: net_forward.1
= control target key start
LH: loop header
LB: loop body
LE: loop exit
PB: predicated region body
PF: predicated region fallthrough
CT: control target
= control target key end

     0   :  { %vm119_vm0 = vcmask 523264   ;;  %s2389_s0 = inlined_call_operand.vmem [shape: f32[28,192], index: 0, kind: input, shape index: {}]   ;;  %s2390_s1 = inlined_call_operand.vmem [shape: f32[192,336], index: 1, kind: input, shape index: {}]   ;;  %s2391_s2 = inlined_call_operand.vmem [shape: f32[1,84], index: 2, kind: input, shape index: {}]   ;;  %s2392_s3 = inlined_call_operand.vmem [shape: f32[420,160], index: 3, kind: input, shape index: {}]   ;;  %s2393_s4 = inlined_call_operand.vmem [shape: f32[1,400], index: 4, kind: input, shape index: {}]   ;;  %s2394_s5 = inlined_call_operand.vmem [shape: f32[400,120], index: 5, kind: input, shape index: {}]   ;;  %s2395_s6 = inlined_call_operand.vmem [shape: f32[1,120], index: 6, kind: input, shape index: {}]   ;;  %s2396_s7 = inlined_call_operand.vmem [shape: f32[120,84], index: 7, kind: input, shape index: {}]   ;;  %s2397_s8 = inlined_call_operand.vmem [shape: f32[1,84], index: 8, kind: input, shape index: {}]   ;;  %s2398_s9 = inlined_call_operand.vmem [shape: f32[84,10], index: 9, kind: input, shape index: {}]   ;;  %s2399_s10 = inlined_call_operand.vmem [shape: f32[1,10], index: 10, kind: input, shape index: {}]   ;;  %s2400_s11 = inlined_call_operand.hbm [shape: f32[2,10], index: 11, kind: output, shape index: {}]  }
   0x1   :  { %v92_v0 = vld [vmem:[%s2390_s1 + $0x168] sm:$0xff]  ;;  %v93_v1 = vld [vmem:[%s2390_s1 + $0x170] sm:$0xff]  ;;  %v90_v4 = vld [vmem:[%s2390_s1 + $0x158] sm:$0xff] }
   0x2   :  { %v117_v2 = vld [vmem:[%s2390_s1 + $0x230] sm:$0xff]  ;;  %132 = vmatpush.msra.mxu0 %v92_v0  ;;  %190 = vmatpush.msra.mxu2 %v93_v1  ;;  %v114_v5 = vld [vmem:[%s2390_s1 + $0x218] sm:$0xff]  ;;  %v87_v7 = vld [vmem:[%s2390_s1 + $0x140] sm:$0xff] }
   0x3   :  { %v89_v3 = vld [vmem:[%s2390_s1 + $0x150] sm:$0xff]  ;;  %227 = vmatpush.msra.mxu3 %v117_v2  ;;  %v86_v6 = vld [vmem:[%s2390_s1 + $0x138] sm:$0xff]  ;;  %v111_v8 = vld [vmem:[%s2390_s1 + $0x200] sm:$0xff] }
   0x4   :  { %133 = vmatpush.msra.mxu0 %v89_v3  ;;  %191 = vmatpush.msra.mxu2 %v90_v4  ;;  %v116_v9 = vld [vmem:[%s2390_s1 + $0x228] sm:$0xff]  ;;  %v83_v10 = vld [vmem:[%s2390_s1 + $0x120] sm:$0xff]  ;;  %v113_v12 = vld [vmem:[%s2390_s1 + $0x210] sm:$0xff] }
   0x5   :  { %228 = vmatpush.msra.mxu3 %v114_v5  ;;  %169 = vmatpush.msra.mxu1 %v116_v9  ;;  %v84_v11 = vld [vmem:[%s2390_s1 + $0x128] sm:$0xff]  ;;  %v81_v15 = vld [vmem:[%s2390_s1 + $0x110] sm:$0xff]  ;;  %v110_v16 = vld [vmem:[%s2390_s1 + $0x1f8] sm:$0xff] }
   0x6   :  { %134 = vmatpush.msra.mxu0 %v86_v6  ;;  %192 = vmatpush.msra.mxu2 %v87_v7  ;;  %v108_v13 = vld [vmem:[%s2390_s1 + $0x1e8] sm:$0xff]  ;;  %v105_v17 = vld [vmem:[%s2390_s1 + $0x1d0] sm:$0xff]  ;;  %v107_v18 = vld [vmem:[%s2390_s1 + $0x1e0] sm:$0xff] }
   0x7   :  { %229 = vmatpush.msra.mxu3 %v111_v8  ;;  %v80_v14 = vld [vmem:[%s2390_s1 + $0x108] sm:$0xff]  ;;  %170 = vmatpush.msra.mxu1 %v113_v12  ;;  %v77_v19 = vld [vmem:[%s2390_s1 + $0xf0] sm:$0xff]  ;;  %v78_v20 = vld [vmem:[%s2390_s1 + $0xf8] sm:$0xff] }
   0x8   :  { %135 = vmatpush.msra.mxu0 %v83_v10  ;;  %193 = vmatpush.msra.mxu2 %v84_v11  ;;  %v102_v21 = vld [vmem:[%s2390_s1 + $0x1b8] sm:$0xff]  ;;  %v104_v22 = vld [vmem:[%s2390_s1 + $0x1c8] sm:$0xff]  ;;  %v75_v24 = vld [vmem:[%s2390_s1 + $0xe0] sm:$0xff] }
   0x9   :  { %230 = vmatpush.msra.mxu3 %v108_v13  ;;  %171 = vmatpush.msra.mxu1 %v110_v16  ;;  %v74_v23 = vld [vmem:[%s2390_s1 + $0xd8] sm:$0xff]  ;;  %v99_v25 = vld [vmem:[%s2390_s1 + $0x1a0] sm:$0xff]  ;;  %v101_v26 = vld [vmem:[%s2390_s1 + $0x1b0] sm:$0xff] }
   0xa   :  { %136 = vmatpush.msra.mxu0 %v80_v14  ;;  %194 = vmatpush.msra.mxu2 %v81_v15  ;;  %v71_v27 = vld [vmem:[%s2390_s1 + $0xc0] sm:$0xff]  ;;  %v72_v28 = vld [vmem:[%s2390_s1 + $0xc8] sm:$0xff]  ;;  %v98_v30 = vld [vmem:[%s2390_s1 + $0x198] sm:$0xff] }
   0xb   :  { %231 = vmatpush.msra.mxu3 %v105_v17  ;;  %172 = vmatpush.msra.mxu1 %v107_v18  ;;  %v96_v29 = vld [vmem:[%s2390_s1 + $0x188] sm:$0xff]  ;;  %v118_v33 = vld [vmem:[%s2390_s1 + $0x238] sm:$0xff]  ;;  %v69_v34 = vld [vmem:[%s2390_s1 + $0xb0] sm:$0xff] }
   0xc   :  { %137 = vmatpush.msra.mxu0 %v77_v19  ;;  %195 = vmatpush.msra.mxu2 %v78_v20  ;;  %v1489_v31 = vld [vmem:[%s2389_s0 + $0x8] sm:$0xff]  ;;  %v65_v35 = vld [vmem:[%s2390_s1 + $0x90] sm:$0xff]  ;;  %v95_v36 = vld [vmem:[%s2390_s1 + $0x180] sm:$0xff] }
   0xd   :  { %232 = vmatpush.msra.mxu3 %v102_v21  ;;  %173 = vmatpush.msra.mxu1 %v104_v22  ;;  %v68_v32 = vld [vmem:[%s2390_s1 + $0xa8] sm:$0xff]  ;;  %v66_v37 = vld [vmem:[%s2390_s1 + $0x98] sm:$0xff]  ;;  %v115_v38 = vld [vmem:[%s2390_s1 + $0x220] sm:$0xff] }
   0xe   :  { %138 = vmatpush.msra.mxu0 %v74_v23  ;;  %196 = vmatpush.msra.mxu2 %v75_v24  ;;  %v62_v39 = vld [vmem:[%s2390_s1 + $0x78] sm:$0xff]  ;;  %v63_v40 = vld [vmem:[%s2390_s1 + $0x80] sm:$0xff]  ;;  %v112_v43 = vld [vmem:[%s2390_s1 + $0x208] sm:$0xff] }
   0xf   :  { %233 = vmatpush.msra.mxu3 %v99_v25  ;;  %174 = vmatpush.msra.mxu1 %v101_v26  ;;  %v94_v41 = vld [vmem:[%s2390_s1 + $0x178] sm:$0xff]  ;;  %v59_v42 = vld [vmem:[%s2390_s1 + $0x60] sm:$0xff]  ;;  %v60_v44 = vld [vmem:[%s2390_s1 + $0x68] sm:$0xff] }
  0x10   :  { %139 = vmatpush.msra.mxu0 %v71_v27  ;;  %197 = vmatpush.msra.mxu2 %v72_v28  ;;  %v91_v45 = vld [vmem:[%s2390_s1 + $0x160] sm:$0xff]  ;;  %v1540_v46 = vld [vmem:[%s2389_s0 + $0x18] sm:$0xff]  ;;  %v56_v47 = vld [vmem:[%s2390_s1 + $0x48] sm:$0xff] }
  0x11   :  { %234 = vmatpush.msra.mxu3 %v96_v29  ;;  %175 = vmatpush.msra.mxu1 %v98_v30  ;;  %v57_v48 = vld [vmem:[%s2390_s1 + $0x50] sm:$0xff]  ;;  %v88_v49 = vld [vmem:[%s2390_s1 + $0x148] sm:$0xff]  ;;  %v54_v52 = vld [vmem:[%s2390_s1 + $0x38] sm:$0xff] }
  0x12   :  { %1251 = vmatmul.msk.f32.vlgmr.msra.gmra.mxu3 %vm119_vm0, %v1489_v31  ;;  %140 = vmatpush.msra.mxu0 %v68_v32  ;;  %v53_v50 = vld [vmem:[%s2390_s1 + $0x30] sm:$0xff]  ;;  %v50_v54 = vld [vmem:[%s2390_s1 + $0x18] sm:$0xff]  ;;  %v51_v55 = vld [vmem:[%s2390_s1 + $0x20] sm:$0xff] }
  0x13   :  { %285 = vmatpush.msrb.mxu3 %v118_v33  ;;  %198 = vmatpush.msra.mxu2 %v69_v34  ;;  %v109_v51 = vld [vmem:[%s2390_s1 + $0x1f0] sm:$0xff]  ;;  %v82_v56 = vld [vmem:[%s2390_s1 + $0x118] sm:$0xff]  ;;  %v47_v57 = vld [vmem:[%s2390_s1] sm:$0xff] }
  0x14   :  { %141 = vmatpush.msra.mxu0 %v65_v35  ;;  %176 = vmatpush.msra.mxu1 %v95_v36  ;;  %v85_v53 = vld [vmem:[%s2390_s1 + $0x130] sm:$0xff]  ;;  %v106_v58 = vld [vmem:[%s2390_s1 + $0x1d8] sm:$0xff] }
  0x15   :  { %199 = vmatpush.msra.mxu2 %v66_v37  ;;  %286 = vmatpush.msrb.mxu3 %v115_v38 }
  0x16   :  { %142 = vmatpush.msra.mxu0 %v62_v39  ;;  %1247 = vmatmul.msk.f32.vlgmr.msra.gmra.mxu1 %vm119_vm0, %v1489_v31 }
  0x17   :  { %200 = vmatpush.msra.mxu2 %v63_v40  ;;  %248 = vmatpush.msrb.mxu1 %v94_v41 }
  0x18   :  { %143 = vmatpush.msra.mxu0 %v59_v42  ;;  %287 = vmatpush.msrb.mxu3 %v112_v43 }
  0x19   :  { %201 = vmatpush.msra.mxu2 %v60_v44  ;;  %249 = vmatpush.msrb.mxu1 %v91_v45 }
  0x1a   :  { %1252 = vmatmul.msk.f32.gmra.mxu3 %vm119_vm0, %v1540_v46  ;;  %144 = vmatpush.msra.mxu0 %v56_v47 }
  0x1b   :  { %202 = vmatpush.msra.mxu2 %v57_v48  ;;  %250 = vmatpush.msrb.mxu1 %v88_v49 }
  0x1c   :  { %145 = vmatpush.msra.mxu0 %v53_v50  ;;  %288 = vmatpush.msrb.mxu3 %v109_v51 }
  0x1d   :  { %203 = vmatpush.msra.mxu2 %v54_v52  ;;  %251 = vmatpush.msrb.mxu1 %v85_v53 }
  0x1e   :  { %16 = vsyncpa [#allocation3], 0  ;;  %146 = vmatpush.msra.mxu0 %v50_v54  ;;  %1248 = vmatmul.msk.f32.gmra.mxu1 %vm119_vm0, %v1540_v46  ;;  %v48_v59 = vld [vmem:[%s2390_s1 + $0x8] sm:$0xff]  ;;  %v39_v60 = vld [vmem:[%s2389_s0] sm:$0xff]  ;;  %vm330_vm1 = vcmask 359424   ;;  %vm434_vm2 = vcmask 1044480  }
  0x1f   :  { %204 = vmatpush.msra.mxu2 %v51_v55  ;;  %252 = vmatpush.msrb.mxu1 %v82_v56  ;;  %v44_v61 = vld [vmem:[%s2389_s0 + $0x28] sm:$0xff]  ;;  %v79_v62 = vld [vmem:[%s2390_s1 + $0x100] sm:$0xff]  ;;  %v73_v2 = vld [vmem:[%s2390_s1 + $0xd0] sm:$0xff]  ;;  %vm407_vm3 = vcmask 1041408   ;;  %vm424_vm4 = vcmask 1045504   ;;  %vm410_vm5 = vcmask 1046528  }
  0x20   :  { %147 = vmatpush.msra.mxu0 %v47_v57  ;;  %289 = vmatpush.msrb.mxu3 %v106_v58  ;;  %v103_v63 = vld [vmem:[%s2390_s1 + $0x1c0] sm:$0xff]  ;;  %v76_v0 = vld [vmem:[%s2390_s1 + $0xe8] sm:$0xff]  ;;  %v97_v3 = vld [vmem:[%s2390_s1 + $0x190] sm:$0xff]  ;;  %vm416_vm6 = vcmask 1042432   ;;  %vm401_vm7 = vcmask 1043456   ;;  %s1326_s29 = smov 40  }
  0x21   :  { %205 = vmatpush.msra.mxu2 %v48_v59  ;;  %148 = vmatmul.f32.vlgmr.msra.gmra.mxu0 %v39_v60  ;;  %v100_v1 = vld [vmem:[%s2390_s1 + $0x1a8] sm:$0xff]  ;;  %v70_v4 = vld [vmem:[%s2390_s1 + $0xb8] sm:$0xff]  ;;  %v41_v5 = vld [vmem:[%s2389_s0 + $0x10] sm:$0xff]  ;;  %s1327_s13 = smov 84   ;;  %vm439_vm8 = vcmask 1040384   ;;  %vm489_vm9 = vcmask 687104  }
  0x22   :  { %206 = vmatmul.f32.vlgmr.msra.gmra.mxu2 %v39_v60  ;;  %1253 = vmatmul.msk.f32.gmra.mxu3 %vm119_vm0, %v44_v61  ;;  %v46_v6 = vld [vmem:[%s2389_s0 + $0x38] sm:$0xf]  ;;  %v67_v7 = vld [vmem:[%s2390_s1 + $0xa0] sm:$0xff]  ;;  %v64_v8 = vld [vmem:[%s2390_s1 + $0x88] sm:$0xff]  ;;  %vm493_vm10 = vcmask 326656   ;;  %vm497_vm11 = vcmask 1014784  }
  0x23   :  { %253 = vmatpush.msrb.mxu1 %v79_v62  ;;  %290 = vmatpush.msrb.mxu3 %v103_v63  ;;  %v61_v9 = vld [vmem:[%s2390_s1 + $0x70] sm:$0xff]  ;;  %v58_v10 = vld [vmem:[%s2390_s1 + $0x58] sm:$0xff]  ;;  %v43_v11 = vld [vmem:[%s2389_s0 + $0x20] sm:$0xff]  ;;  %vm611_vm12 = vcmask 293888   ;;  %vm501_vm13 = vcmask 654336   ;;  %s1330_s14 = smov 64  }
  0x24   :  { %v55_v12 = vld [vmem:[%s2390_s1 + $0x40] sm:$0xff]  ;;  %v52_v13 = vld [vmem:[%s2390_s1 + $0x28] sm:$0xff]  ;;  %v49_v14 = vld [vmem:[%s2390_s1 + $0x10] sm:$0xff]  ;;  %s1323_s1 = smov 88   ;;  %vm904_vm14 = vcmask 130048   ;;  %vm908_vm15 = vcmask 261120  }
  0x25   :  { %254 = vmatpush.msrb.mxu1 %v76_v0  ;;  %291 = vmatpush.msrb.mxu3 %v100_v1  ;;  %v45_v15 = vld [vmem:[%s2389_s0 + $0x30] sm:$0xf]  ;;  %s1322_s0 = smov 44   ;;  %s1331_s24 = smov 32  }
  0x26   :  { %1249 = vmatmul.msk.f32.gmra.mxu1 %vm119_vm0, %v44_v61  ;;  %s1332_s27 = smov [#allocation2]  }
  0x27   :  { %255 = vmatpush.msrb.mxu1 %v73_v2  ;;  %292 = vmatpush.msrb.mxu3 %v97_v3  ;;  %s1236_s28 = sshll.u32 %s1332_s27, 4  ;;  %s1237_s28 = int_to_ptr.vmem [resolvable:$true] %s1236_s28 }
  0x29   :  { %256 = vmatpush.msrb.mxu1 %v70_v4  ;;  %151 = vmatmul.f32.gmra.mxu0 %v41_v5 }
  0x2a   :  { %209 = vmatmul.f32.gmra.mxu2 %v41_v5  ;;  %1254 = vmatmul.msk.f32.gmra.mxu3 %vm119_vm0, %v46_v6 }
  0x2b   :  { %257 = vmatpush.msrb.mxu1 %v67_v7 }
  0x2d   :  { %258 = vmatpush.msrb.mxu1 %v64_v8 }
  0x2e   :  { %1250 = vmatmul.msk.f32.gmra.mxu1 %vm119_vm0, %v46_v6 }
  0x2f   :  { %259 = vmatpush.msrb.mxu1 %v61_v9  ;;  %v1681_v9 = vld [vmem:[%s2391_s2] ss:$0 sm:$0xff]  ;;  %s1324_s2 = smov 124  }
  0x31   :  { %260 = vmatpush.msrb.mxu1 %v58_v10  ;;  %154 = vmatmul.f32.gmra.mxu0 %v43_v11 }
  0x32   :  { %212 = vmatmul.f32.gmra.mxu2 %v43_v11  ;;  %1255 = vmatmul.msk.f32.vlgmr.msrb.gmra.mxu3 %vm119_vm0, %v1489_v31 }
  0x33   :  { %261 = vmatpush.msrb.mxu1 %v55_v12 }
  0x35   :  { %262 = vmatpush.msrb.mxu1 %v52_v13 }
  0x37   :  { %263 = vmatpush.msrb.mxu1 %v49_v14 }
  0x38   :  { %264 = vmatmul.f32.vlgmr.msrb.gmra.mxu1 %v39_v60 }
  0x39   :  { %157 = vmatmul.f32.gmra.mxu0 %v45_v15 }
  0x3a   :  { %215 = vmatmul.f32.gmra.mxu2 %v45_v15  ;;  %1256 = vmatmul.msk.f32.gmra.mxu3 %vm119_vm0, %v1540_v46 }
  0x40   :  { %267 = vmatmul.f32.gmra.mxu1 %v41_v5 }
  0x42   :  { %1257 = vmatmul.msk.f32.gmra.mxu3 %vm119_vm0, %v44_v61 }
  0x48   :  { %270 = vmatmul.f32.gmra.mxu1 %v43_v11 }
  0x4a   :  { %1258 = vmatmul.msk.f32.gmra.mxu3 %vm119_vm0, %v46_v6 }
  0x50   :  { %273 = vmatmul.f32.gmra.mxu1 %v45_v15 }
  0x93   :  { %v178_v16 = vpop.f32.mrf.mxu1 }
  0x95   :  { %v236_v17 = vpop.f32.mrf.mxu3 }
  0x9b   :  { %v181_v18 = vpop.f32.mrf.mxu1 }
  0x9d   :  { %v239_v19 = vpop.f32.mrf.mxu3 }
  0x9e   :  { %v149_v32 = vpop.f32.mrf.mxu0 }
  0x9f   :  { %v179_v48 = vadd.f32 %v178_v16, %v149_v32  ;;  %v535_v32 = vld [vmem:[%s2392_s3 + $0xf0] sm:$0xff] }
  0xa0   :  { %624 = vmatpush.msrb.mxu0 %v535_v32  ;;  %v515_v32 = vld [vmem:[%s2392_s3 + $0x50] sm:$0xff] }
  0xa3   :  { %v184_v20 = vpop.f32.mrf.mxu1 }
  0xa5   :  { %v207_v21 = vpop.f32.mrf.mxu2  ;;  %v242_v22 = vpop.f32.mrf.mxu3 }
  0xa6   :  { %v237_v23 = vadd.f32 %v236_v17, %v207_v21  ;;  %v152_v39 = vpop.f32.mrf.mxu0 }
  0xa7   :  { %v182_v41 = vadd.f32 %v181_v18, %v152_v39 }
  0xa8   :  { %316 = vrot.lane.b32.xlu0 %v237_v23, %s1322_s0 }
  0xab   :  { %v187_v24 = vpop.f32.mrf.mxu1 }
  0xad   :  { %v210_v25 = vpop.f32.mrf.mxu2  ;;  %v245_v26 = vpop.f32.mrf.mxu3 }
  0xae   :  { %v240_v27 = vadd.f32 %v239_v19, %v210_v25  ;;  %v155_v44 = vpop.f32.mrf.mxu0 }
  0xaf   :  { %v185_v46 = vadd.f32 %v184_v20, %v155_v44  ;;  %v599_v44 = vld [vmem:[%s2392_s3 + $0x2f0] sm:$0xff] }
  0xb0   :  { %320 = vrot.lane.b32.xlu0 %v240_v27, %s1322_s0  ;;  %676 = vmatpush.msra.mxu1 %v599_v44  ;;  %v541_v44 = vld [vmem:[%s2392_s3 + $0x120] sm:$0xff] }
  0xb5   :  { %v213_v28 = vpop.f32.mrf.mxu2  ;;  %v265_v29 = vpop.f32.mrf.mxu1 }
  0xb6   :  { %v243_v30 = vadd.f32 %v242_v22, %v213_v28  ;;  %v294_v31 = vpop.f32.mrf.mxu3  ;;  %v158_v62 = vpop.f32.mrf.mxu0 }
  0xb7   :  { %v295_v33 = vadd.f32 %v294_v31, %v265_v29  ;;  %v1669_v63 = vadd.f32 %v187_v24, %v158_v62 }
  0xb8   :  { %324 = vrot.lane.b32.xlu2 %v243_v30, %s1322_s0 }
  0xb9   :  { %347 = vrot.lane.b32.xlu1 %v295_v33, %s1322_s0  ;;  %v567_v33 = vld [vmem:[%s2392_s3 + $0x1f0] sm:$0xff] }
  0xba   :  { %650 = vmatpush.msrb.mxu2 %v567_v33  ;;  %v585_v33 = vld [vmem:[%s2392_s3 + $0x280] sm:$0xff] }
  0xbd   :  { %v216_v34 = vpop.f32.mrf.mxu2  ;;  %v268_v35 = vpop.f32.mrf.mxu1 }
  0xbe   :  { %v246_v36 = vadd.f32 %v245_v26, %v216_v34  ;;  %v297_v37 = vpop.f32.mrf.mxu3  ;;  %v533_v34 = vld [vmem:[%s2392_s3 + $0xe0] sm:$0xff] }
  0xbf   :  { %v298_v38 = vadd.f32 %v297_v37, %v268_v35  ;;  %625 = vmatpush.msrb.mxu0 %v533_v34  ;;  %v547_v34 = vld [vmem:[%s2392_s3 + $0x150] sm:$0xff] }
  0xc0   :  { %328 = vrot.lane.b32.xlu0 %v246_v36, %s1322_s0 }
  0xc1   :  { %349 = vrot.lane.b32.xlu1 %v298_v38, %s1322_s0  ;;  %v565_v38 = vld [vmem:[%s2392_s3 + $0x1e0] sm:$0xff] }
  0xc2   :  { %651 = vmatpush.msrb.mxu2 %v565_v38  ;;  %v511_v38 = vld [vmem:[%s2392_s3 + $0x30] sm:$0xff] }
  0xc5   :  { %v271_v40 = vpop.f32.mrf.mxu1 }
  0xc6   :  { %v300_v42 = vpop.f32.mrf.mxu3 }
  0xc7   :  { %v301_v43 = vadd.f32 %v300_v42, %v271_v40 }
  0xc8   :  { %318 = vrot.lane.b32.xlu0 %v182_v41, %s1322_s0 }
  0xc9   :  { %351 = vrot.lane.b32.xlu2 %v301_v43, %s1322_s0  ;;  %v531_v43 = vld [vmem:[%s2392_s3 + $0xd0] sm:$0xff] }
  0xca   :  { %626 = vmatpush.msrb.mxu0 %v531_v43  ;;  %v579_v43 = vld [vmem:[%s2392_s3 + $0x250] sm:$0xff] }
  0xcd   :  { %v274_v45 = vpop.f32.mrf.mxu1 }
  0xce   :  { %v303_v47 = vpop.f32.mrf.mxu3 }
  0xcf   :  { %v304_v49 = vadd.f32 %v303_v47, %v274_v45  ;;  %v597_v47 = vld [vmem:[%s2392_s3 + $0x2e0] sm:$0xff] }
  0xd0   :  { %322 = vrot.lane.b32.xlu0 %v185_v46, %s1322_s0  ;;  %677 = vmatpush.msra.mxu1 %v597_v47  ;;  %v539_v47 = vld [vmem:[%s2392_s3 + $0x110] sm:$0xff] }
  0xd1   :  { %353 = vrot.lane.b32.xlu1 %v304_v49, %s1322_s0  ;;  %314 = vrot.lane.b32.xlu2 %v179_v48, %s1322_s0 }
 0x112   :  { %v325_v50 = vpop.permute.xlu2 %324 }
 0x11a   :  { %v317_v51 = vpop.permute.xlu0 %316 }
 0x122   :  { %v321_v57 = vpop.permute.xlu0 %320 }
 0x123   :  { %v352_v55 = vpop.permute.xlu2 %351 }
 0x124   :  { %v357_v56 = vsel %vm330_vm1, %v325_v50, %v352_v55 }
 0x125   :  { %v365_v60 = vmax.f32 %v243_v30, %v357_v56 }
 0x12b   :  { %v348_v52 = vpop.permute.xlu1 %347  ;;  %v315_v4 = vpop.permute.xlu2 %314 }
 0x12c   :  { %v355_v53 = vsel %vm330_vm1, %v317_v51, %v348_v52  ;;  %v331_v11 = vsel %vm330_vm1, %v315_v4, %v317_v51 }
 0x12d   :  { %v363_v54 = vmax.f32 %v237_v23, %v355_v53  ;;  %v339_v13 = vmax.f32 %v179_v48, %v331_v11 }
 0x12f   :  { %371 = vrot.lane.b32.xlu1 %v363_v54, %s1323_s1  ;;  %v529_v54 = vld [vmem:[%s2392_s3 + $0xc0] sm:$0xff] }
 0x130   :  { %627 = vmatpush.msrb.mxu0 %v529_v54  ;;  %v573_v54 = vld [vmem:[%s2392_s3 + $0x220] sm:$0xff] }
 0x132   :  { %v1673_v0 = vpop.permute.xlu0 %328 }
 0x133   :  { %v350_v58 = vpop.permute.xlu1 %349 }
 0x134   :  { %v356_v59 = vsel %vm330_vm1, %v321_v57, %v350_v58 }
 0x135   :  { %v364_v61 = vmax.f32 %v240_v27, %v356_v59 }
 0x137   :  { %375 = vrot.lane.b32.xlu1 %v365_v60, %s1323_s1  ;;  %373 = vrot.lane.b32.xlu2 %v364_v61, %s1323_s1  ;;  %v527_v60 = vld [vmem:[%s2392_s3 + $0xb0] sm:$0xff] }
 0x138   :  { %628 = vmatpush.msrb.mxu0 %v527_v60  ;;  %v569_v60 = vld [vmem:[%s2392_s3 + $0x200] sm:$0xff] }
 0x13a   :  { %v319_v5 = vpop.permute.xlu0 %318 }
 0x13b   :  { %v332_v6 = vsel %vm330_vm1, %v319_v5, %v321_v57  ;;  %v561_v57 = vld [vmem:[%s2392_s3 + $0x1c0] sm:$0xff] }
 0x13c   :  { %v340_v8 = vmax.f32 %v182_v41, %v332_v6 }
 0x13f   :  { %326 = vrot.lane.b32.xlu2 %v1669_v63, %s1322_s0 }
 0x142   :  { %v323_v15 = vpop.permute.xlu0 %322 }
 0x143   :  { %v354_v1 = vpop.permute.xlu1 %353  ;;  %v333_v19 = vsel %vm330_vm1, %v323_v15, %v325_v50  ;;  %v557_v15 = vld [vmem:[%s2392_s3 + $0x1a0] sm:$0xff] }
 0x144   :  { %v358_v2 = vsel %vm330_vm1, %v1673_v0, %v354_v1  ;;  %v341_v21 = vmax.f32 %v185_v46, %v333_v19  ;;  %v563_v46 = vld [vmem:[%s2392_s3 + $0x1d0] sm:$0xff] }
 0x145   :  { %v366_v3 = vmax.f32 %v246_v36, %v358_v2  ;;  %652 = vmatpush.msrb.mxu2 %v563_v46  ;;  %v559_v1 = vld [vmem:[%s2392_s3 + $0x1b0] sm:$0xff]  ;;  %v577_v46 = vld [vmem:[%s2392_s3 + $0x240] sm:$0xff] }
 0x146   :  { %v555_v19 = vld [vmem:[%s2392_s3 + $0x190] sm:$0xff] }
 0x147   :  { %377 = vrot.lane.b32.xlu0 %v366_v3, %s1323_s1  ;;  %s1325_s1 = smov 80   ;;  %653 = vmatpush.msrb.mxu2 %v561_v57  ;;  %v571_v57 = vld [vmem:[%s2392_s3 + $0x210] sm:$0xff] }
 0x149   :  { %654 = vmatpush.msrb.mxu2 %v559_v1  ;;  %v601_v1 = vld [vmem:[%s2392_s3 + $0x300] sm:$0xff] }
 0x14b   :  { %655 = vmatpush.msrb.mxu2 %v557_v15  ;;  %v554_v15 = vld [vmem:[%s2392_s3 + $0x188] sm:$0xff] }
 0x14d   :  { %656 = vmatpush.msrb.mxu2 %v555_v19  ;;  %v608_v19 = vld [vmem:[%s2392_s3 + $0x338] sm:$0xff] }
 0x191   :  { %v374_v7 = vpop.permute.xlu2 %373 }
 0x192   :  { %v384_v10 = vmax.f32 %v340_v8, %v374_v7 }
 0x194   :  { %v392_v12 = vadd.f32 %v1681_v9, %v384_v10 }
 0x196   :  { %v1685_v17 = vmax.f32 %v392_v12, 0.0 }
 0x198   :  { %v436_v23 = vrot.slane %v1685_v17, 3  ;;  %v402_v30 = vrot.slane %v1685_v17, 4  ;;  %v426_v35 = vrot.slane %v1685_v17, 2  ;;  %v412_v36 = vrot.slane %v1685_v17, 1 }
 0x199   :  { %v417_v37 = vrot.slane %v1685_v17, 5  ;;  %v327_v49 = vpop.permute.xlu2 %326 }
 0x19a   :  { %v334_v62 = vsel %vm330_vm1, %v327_v49, %v1673_v0  ;;  %v505_v49 = vld [vmem:[%s2392_s3] sm:$0xff]  ;;  %vm912_vm1 = vcmask 392192  }
 0x19b   :  { %v342_v2 = vmax.f32 %v1669_v63, %v334_v62  ;;  %v564_v62 = vld [vmem:[%s2392_s3 + $0x1d8] sm:$0xff] }
 0x1a1   :  { %v372_v14 = vpop.permute.xlu1 %371 }
 0x1a2   :  { %v383_v16 = vmax.f32 %v339_v13, %v372_v14  ;;  %v525_v13 = vld [vmem:[%s2392_s3 + $0xa0] sm:$0xff]  ;;  %v595_v14 = vld [vmem:[%s2392_s3 + $0x2d0] sm:$0xff] }
 0x1a3   :  { %629 = vmatpush.msrb.mxu0 %v525_v13  ;;  %678 = vmatpush.msra.mxu1 %v595_v14  ;;  %v522_v13 = vld [vmem:[%s2392_s3 + $0x88] sm:$0xff]  ;;  %v592_v14 = vld [vmem:[%s2392_s3 + $0x2b8] sm:$0xff] }
 0x1a4   :  { %v391_v18 = vadd.f32 %v1681_v9, %v383_v16  ;;  %v609_v16 = vld [vmem:[%s2392_s3 + $0x340] sm:$0xf] }
 0x1a5   :  { %1259 = vmatpush.msk.msra.mxu3 %vm401_vm7, %v609_v16  ;;  %v520_v16 = vld [vmem:[%s2392_s3 + $0x78] sm:$0xff] }
 0x1a6   :  { %v1689_v20 = vmax.f32 %v391_v18, 0.0  ;;  %v593_v18 = vld [vmem:[%s2392_s3 + $0x2c0] sm:$0xff] }
 0x1a7   :  { %679 = vmatpush.msra.mxu1 %v593_v18  ;;  %v552_v18 = vld [vmem:[%s2392_s3 + $0x178] sm:$0xff] }
 0x1a8   :  { %v435_v22 = vrot.slane %v1689_v20, 3  ;;  %v425_v28 = vrot.slane %v1689_v20, 2  ;;  %v411_v31 = vrot.slane %v1689_v20, 1  ;;  %v445_v4 = vrot.slane %v1689_v20, 4 }
 0x1a9   :  { %v376_v24 = vpop.permute.xlu1 %375 }
 0x1aa   :  { %v385_v25 = vmax.f32 %v341_v21, %v376_v24  ;;  %v437_v26 = vsel %vm434_vm2, %v435_v22, %v436_v23  ;;  %v427_v45 = vsel %vm424_vm4, %v425_v28, %v426_v35  ;;  %v413_v51 = vsel %vm410_vm5, %v411_v31, %v412_v36  ;;  %v521_v21 = vld [vmem:[%s2392_s3 + $0x80] sm:$0xff]  ;;  %v591_v22 = vld [vmem:[%s2392_s3 + $0x2b0] sm:$0xff] }
 0x1ab   :  { %470 = vrot.lane.b32.xlu0 %v437_v26, %s1324_s2  ;;  %v446_v6 = vsel %vm401_vm7, %v445_v4, %v402_v30  ;;  %v519_v24 = vld [vmem:[%s2392_s3 + $0x70] sm:$0xff]  ;;  %680 = vmatpush.msra.mxu1 %v591_v22  ;;  %v549_v31 = vld [vmem:[%s2392_s3 + $0x160] sm:$0xff]  ;;  %v562_v4 = vld [vmem:[%s2392_s3 + $0x1c8] sm:$0xff]  ;;  %vm946_vm2 = vcmask 916480  }
 0x1ac   :  { %v393_v27 = vadd.f32 %v1681_v9, %v385_v25  ;;  %v589_v25 = vld [vmem:[%s2392_s3 + $0x2a0] sm:$0xff]  ;;  %v551_v26 = vld [vmem:[%s2392_s3 + $0x170] sm:$0xff]  ;;  %v588_v22 = vld [vmem:[%s2392_s3 + $0x298] sm:$0xff] }
 0x1ad   :  { %681 = vmatpush.msra.mxu1 %v589_v25  ;;  %v587_v28 = vld [vmem:[%s2392_s3 + $0x290] sm:$0xff]  ;;  %v586_v25 = vld [vmem:[%s2392_s3 + $0x288] sm:$0xff] }
 0x1ae   :  { %v1696_v29 = vmax.f32 %v393_v27, 0.0  ;;  %v517_v27 = vld [vmem:[%s2392_s3 + $0x60] sm:$0xff] }
 0x1af   :  { %682 = vmatpush.msra.mxu1 %v587_v28  ;;  %v584_v28 = vld [vmem:[%s2392_s3 + $0x278] sm:$0xff] }
 0x1b0   :  { %v448_v39 = vsel %vm407_vm3, %v402_v30, %v1696_v29  ;;  %v429_v40 = vrot.slane %v1696_v29, 6  ;;  %v418_v41 = vrot.slane %v1696_v29, 5  ;;  %v440_v42 = vrot.slane %v1696_v29, 7 }
 0x1b1   :  { %v403_v48 = vrot.slane %v1696_v29, 4  ;;  %683 = vmatpush.msra.mxu1 %v585_v33  ;;  %v582_v33 = vld [vmem:[%s2392_s3 + $0x268] sm:$0xff] }
 0x1b2   :  { %v433_v50 = vsel %vm407_vm3, %v426_v35, %v429_v40  ;;  %v419_v52 = vsel %vm416_vm6, %v417_v37, %v418_v41  ;;  %v444_v53 = vsel %vm407_vm3, %v436_v23, %v440_v42  ;;  %v553_v23 = vld [vmem:[%s2392_s3 + $0x180] sm:$0xff] }
 0x1b3   :  { %482 = vrot.lane.b32.xlu0 %v448_v39, %s1325_s1  ;;  %v1282_v55 = vpack.i.bf16 %v433_v50, %v427_v45  ;;  %v423_v56 = vsel %vm407_vm3, %v412_v36, %v419_v52  ;;  %v404_v58 = vsel %vm401_vm7, %v402_v30, %v403_v48  ;;  %657 = vmatpush.msrb.mxu2 %v553_v23  ;;  %v607_v30 = vld [vmem:[%s2392_s3 + $0x330] sm:$0xff]  ;;  %v513_v35 = vld [vmem:[%s2392_s3 + $0x40] sm:$0xff]  ;;  %v550_v23 = vld [vmem:[%s2392_s3 + $0x168] sm:$0xff] }
 0x1b4   :  { %v1287_v59 = vpack.i.bf16 %v423_v56, %v413_v51  ;;  %v1754_v61 = vsel %vm407_vm3, %v1685_v17, %v404_v58  ;;  %v523_v17 = vld [vmem:[%s2392_s3 + $0x90] sm:$0xff]  ;;  %714 = vmatpush.msra.mxu3 %v607_v30  ;;  %v545_v37 = vld [vmem:[%s2392_s3 + $0x140] sm:$0xff]  ;;  %v534_v56 = vld [vmem:[%s2392_s3 + $0xe8] sm:$0xff] }
 0x1b5   :  { %1283 = vrot.lane.b32.xlu2 %v1282_v55, %s1326_s29  ;;  %630 = vmatpush.msrb.mxu0 %v523_v17  ;;  %v583_v36 = vld [vmem:[%s2392_s3 + $0x270] sm:$0xff]  ;;  %v581_v39 = vld [vmem:[%s2392_s3 + $0x260] sm:$0xff]  ;;  %v568_v55 = vld [vmem:[%s2392_s3 + $0x1f8] sm:$0xff] }
 0x1b6   :  { %1288 = vrot.lane.b32.xlu1 %v1287_v59, %s1327_s13  ;;  %658 = vmatpush.msrb.mxu2 %v551_v26  ;;  %v507_v45 = vld [vmem:[%s2392_s3 + $0x10] sm:$0xff]  ;;  %v537_v52 = vld [vmem:[%s2392_s3 + $0x100] sm:$0xff]  ;;  %v566_v58 = vld [vmem:[%s2392_s3 + $0x1e8] sm:$0xff] }
 0x1b7   :  { %631 = vmatpush.msrb.mxu0 %v521_v21  ;;  %684 = vmatpush.msra.mxu1 %v583_v36  ;;  %v575_v50 = vld [vmem:[%s2392_s3 + $0x230] sm:$0xff]  ;;  %v532_v59 = vld [vmem:[%s2392_s3 + $0xd8] sm:$0xff]  ;;  %v590_v17 = vld [vmem:[%s2392_s3 + $0x2a8] sm:$0xff] }
 0x1b8   :  { %659 = vmatpush.msrb.mxu2 %v549_v31  ;;  %v603_v51 = vld [vmem:[%s2392_s3 + $0x310] sm:$0xff]  ;;  %v518_v21 = vld [vmem:[%s2392_s3 + $0x68] sm:$0xff]  ;;  %v548_v26 = vld [vmem:[%s2392_s3 + $0x158] sm:$0xff] }
 0x1b9   :  { %v378_v3 = vpop.permute.xlu0 %377  ;;  %632 = vmatpush.msrb.mxu0 %v519_v24  ;;  %685 = vmatpush.msra.mxu1 %v581_v39  ;;  %v516_v24 = vld [vmem:[%s2392_s3 + $0x58] sm:$0xff]  ;;  %v606_v30 = vld [vmem:[%s2392_s3 + $0x328] sm:$0xff] }
 0x1ba   :  { %v386_v5 = vmax.f32 %v342_v2, %v378_v3  ;;  %660 = vmatpush.msrb.mxu2 %v547_v34  ;;  %v530_v2 = vld [vmem:[%s2392_s3 + $0xc8] sm:$0xff]  ;;  %v600_v3 = vld [vmem:[%s2392_s3 + $0x2f8] sm:$0xff] }
 0x1bb   :  { %633 = vmatpush.msrb.mxu0 %v517_v27  ;;  %686 = vmatpush.msra.mxu1 %v579_v43  ;;  %v514_v27 = vld [vmem:[%s2392_s3 + $0x48] sm:$0xff]  ;;  %v544_v34 = vld [vmem:[%s2392_s3 + $0x138] sm:$0xff] }
 0x1bc   :  { %v394_v0 = vadd.f32 %v1681_v9, %v386_v5  ;;  %661 = vmatpush.msrb.mxu2 %v545_v37  ;;  %v528_v5 = vld [vmem:[%s2392_s3 + $0xb8] sm:$0xff]  ;;  %v546_v31 = vld [vmem:[%s2392_s3 + $0x148] sm:$0xff] }
 0x1bd   :  { %472 = vrot.lane.b32.xlu2 %v444_v53, %s1324_s2  ;;  %634 = vmatpush.msrb.mxu0 %v515_v32  ;;  %v536_v53 = vld [vmem:[%s2392_s3 + $0xf8] sm:$0xff]  ;;  %v542_v37 = vld [vmem:[%s2392_s3 + $0x128] sm:$0xff] }
 0x1be   :  { %v398_v7 = vmax.f32 %v394_v0, 0.0  ;;  %480 = vrot.lane.b32.xlu1 %v446_v6, %s1325_s1  ;;  %687 = vmatpush.msra.mxu1 %v577_v46  ;;  %v598_v0 = vld [vmem:[%s2392_s3 + $0x2e8] sm:$0xff]  ;;  %v560_v6 = vld [vmem:[%s2392_s3 + $0x1b8] sm:$0xff] }
 0x1bf   :  { %635 = vmatpush.msrb.mxu0 %v513_v35  ;;  %v512_v32 = vld [vmem:[%s2392_s3 + $0x38] sm:$0xff]  ;;  %v510_v35 = vld [vmem:[%s2392_s3 + $0x28] sm:$0xff] }
 0x1c0   :  { %v441_v8 = vrot.slane %v398_v7, 7  ;;  %v430_v10 = vrot.slane %v398_v7, 6  ;;  %v420_v11 = vrot.slane %v398_v7, 5  ;;  %688 = vmatpush.msra.mxu1 %v575_v50  ;;  %v580_v36 = vld [vmem:[%s2392_s3 + $0x258] sm:$0xff]  ;;  %v574_v46 = vld [vmem:[%s2392_s3 + $0x228] sm:$0xff] }
 0x1c1   :  { %636 = vmatpush.msrb.mxu0 %v511_v38  ;;  %v604_v38 = vld [vmem:[%s2392_s3 + $0x318] sm:$0xff] }
 0x1c2   :  { %v442_v63 = vsel %vm439_vm8, %v440_v42, %v441_v8  ;;  %v431_v12 = vsel %vm407_vm3, %v429_v40, %v430_v10  ;;  %v421_v9 = vsel %vm416_vm6, %v418_v41, %v420_v11  ;;  %v605_v40 = vld [vmem:[%s2392_s3 + $0x320] sm:$0xff]  ;;  %v543_v41 = vld [vmem:[%s2392_s3 + $0x130] sm:$0xff]  ;;  %689 = vmatpush.msra.mxu1 %v573_v54  ;;  %v596_v8 = vld [vmem:[%s2392_s3 + $0x2d8] sm:$0xff]  ;;  %vm1229_vm3 = vcmask 74752  }
 0x1c3   :  { %474 = vrot.lane.b32.xlu0 %v442_v63, %s1324_s2  ;;  %715 = vmatpush.msra.mxu3 %v605_v40  ;;  %v509_v42 = vld [vmem:[%s2392_s3 + $0x20] sm:$0xff]  ;;  %v558_v10 = vld [vmem:[%s2392_s3 + $0x1a8] sm:$0xff]  ;;  %v524_v11 = vld [vmem:[%s2392_s3 + $0x98] sm:$0xff] }
 0x1c4   :  { %662 = vmatpush.msrb.mxu2 %v543_v41  ;;  %637 = vmatpush.msrb.mxu0 %v509_v42  ;;  %v594_v63 = vld [vmem:[%s2392_s3 + $0x2c8] sm:$0xff]  ;;  %v508_v39 = vld [vmem:[%s2392_s3 + $0x18] sm:$0xff] }
 0x1c5   :  { %464 = vrot.lane.b32.xlu2 %v431_v12, %s1326_s29  ;;  %716 = vmatpush.msra.mxu3 %v603_v51  ;;  %v610_v12 = vld [vmem:[%s2392_s3 + $0x348] sm:$0xf]  ;;  %v540_v41 = vld [vmem:[%s2392_s3 + $0x118] sm:$0xff] }
 0x1c6   :  { %454 = vrot.lane.b32.xlu1 %v421_v9, %s1327_s13  ;;  %663 = vmatpush.msrb.mxu2 %v541_v44  ;;  %v556_v9 = vld [vmem:[%s2392_s3 + $0x198] sm:$0xff]  ;;  %v578_v40 = vld [vmem:[%s2392_s3 + $0x248] sm:$0xff]  ;;  %s1329_s13 = smov 96  }
 0x1c7   :  { %638 = vmatpush.msrb.mxu0 %v507_v45  ;;  %690 = vmatpush.msra.mxu1 %v571_v57  ;;  %v506_v42 = vld [vmem:[%s2392_s3 + $0x8] sm:$0xff]  ;;  %v576_v43 = vld [vmem:[%s2392_s3 + $0x238] sm:$0xff] }
 0x1c8   :  { %664 = vmatpush.msrb.mxu2 %v539_v47  ;;  %717 = vmatpush.msra.mxu3 %v601_v1  ;;  %v538_v45 = vld [vmem:[%s2392_s3 + $0x108] sm:$0xff] }
 0x1c9   :  { %639 = vmatpush.msrb.mxu0 %v505_v49  ;;  %691 = vmatpush.msra.mxu1 %v569_v60  ;;  %v602_v47 = vld [vmem:[%s2392_s3 + $0x308] sm:$0xff]  ;;  %v572_v49 = vld [vmem:[%s2392_s3 + $0x218] sm:$0xff] }
 0x1ca   :  { %665 = vmatpush.msrb.mxu2 %v537_v52  ;;  %1263 = vmatpush.msk.msrb.mxu3 %vm401_vm7, %v610_v12  ;;  %v570_v51 = vld [vmem:[%s2392_s3 + $0x208] sm:$0xff] }
 0x1cb   :  { %728 = vmatpush.msra.mxu0 %v536_v53  ;;  %780 = vmatpush.msrb.mxu1 %v600_v3 }
 0x1cc   :  { %754 = vmatpush.msra.mxu2 %v568_v55  ;;  %818 = vmatpush.msrb.mxu3 %v608_v19 }
 0x1cd   :  { %729 = vmatpush.msra.mxu0 %v534_v56  ;;  %781 = vmatpush.msrb.mxu1 %v598_v0 }
 0x1ce   :  { %484 = vrot.lane.b32.xlu1 %v398_v7, %s1325_s1  ;;  %755 = vmatpush.msra.mxu2 %v566_v58  ;;  %v526_v7 = vld [vmem:[%s2392_s3 + $0xa8] sm:$0xff]  ;;  %s1328_s3 = smov 112  }
 0x1cf   :  { %730 = vmatpush.msra.mxu0 %v532_v59  ;;  %782 = vmatpush.msrb.mxu1 %v596_v8 }
 0x1d0   :  { %756 = vmatpush.msra.mxu2 %v564_v62  ;;  %819 = vmatpush.msrb.mxu3 %v606_v30 }
 0x1d1   :  { %731 = vmatpush.msra.mxu0 %v530_v2  ;;  %783 = vmatpush.msrb.mxu1 %v594_v63 }
 0x1d2   :  { %757 = vmatpush.msra.mxu2 %v562_v4  ;;  %820 = vmatpush.msrb.mxu3 %v604_v38 }
 0x1d3   :  { %732 = vmatpush.msra.mxu0 %v528_v5  ;;  %784 = vmatpush.msrb.mxu1 %v592_v14 }
 0x1d4   :  { %758 = vmatpush.msra.mxu2 %v560_v6  ;;  %821 = vmatpush.msrb.mxu3 %v602_v47 }
 0x1d5   :  { %733 = vmatpush.msra.mxu0 %v526_v7  ;;  %785 = vmatpush.msrb.mxu1 %v590_v17 }
 0x1d6   :  { %759 = vmatpush.msra.mxu2 %v558_v10 }
 0x1d7   :  { %734 = vmatpush.msra.mxu0 %v524_v11  ;;  %786 = vmatpush.msrb.mxu1 %v588_v22 }
 0x1d8   :  { %760 = vmatpush.msra.mxu2 %v556_v9 }
 0x1d9   :  { %735 = vmatpush.msra.mxu0 %v522_v13  ;;  %787 = vmatpush.msrb.mxu1 %v586_v25 }
 0x1da   :  { %761 = vmatpush.msra.mxu2 %v554_v15 }
 0x1db   :  { %736 = vmatpush.msra.mxu0 %v520_v16  ;;  %788 = vmatpush.msrb.mxu1 %v584_v28 }
 0x1dc   :  { %762 = vmatpush.msra.mxu2 %v552_v18 }
 0x1dd   :  { %737 = vmatpush.msra.mxu0 %v518_v21  ;;  %789 = vmatpush.msrb.mxu1 %v582_v33 }
 0x1de   :  { %763 = vmatpush.msra.mxu2 %v550_v23 }
 0x1df   :  { %738 = vmatpush.msra.mxu0 %v516_v24  ;;  %790 = vmatpush.msrb.mxu1 %v580_v36 }
 0x1e0   :  { %764 = vmatpush.msra.mxu2 %v548_v26 }
 0x1e1   :  { %739 = vmatpush.msra.mxu0 %v514_v27  ;;  %791 = vmatpush.msrb.mxu1 %v578_v40 }
 0x1e2   :  { %765 = vmatpush.msra.mxu2 %v546_v31 }
 0x1e3   :  { %740 = vmatpush.msra.mxu0 %v512_v32  ;;  %792 = vmatpush.msrb.mxu1 %v576_v43 }
 0x1e4   :  { %766 = vmatpush.msra.mxu2 %v544_v34 }
 0x1e5   :  { %741 = vmatpush.msra.mxu0 %v510_v35  ;;  %793 = vmatpush.msrb.mxu1 %v574_v46 }
 0x1e6   :  { %767 = vmatpush.msra.mxu2 %v542_v37 }
 0x1e7   :  { %742 = vmatpush.msra.mxu0 %v508_v39  ;;  %794 = vmatpush.msrb.mxu1 %v572_v49 }
 0x1e8   :  { %768 = vmatpush.msra.mxu2 %v540_v41 }
 0x1e9   :  { %743 = vmatpush.msra.mxu0 %v506_v42  ;;  %795 = vmatpush.msrb.mxu1 %v570_v51 }
 0x1ea   :  { %769 = vmatpush.msra.mxu2 %v538_v45 }
 0x20f   :  { %v1284_v44 = vpop.permute.xlu2 %1283 }
 0x210   :  { %v1285_v52 = vunpack.i.l.bf16 %v1284_v44  ;;  %v1286_v60 = vunpack.i.h.bf16 %v1284_v44 }
 0x217   :  { %v473_v59 = vpop.permute.xlu2 %472 }
 0x21d   :  { %v471_v53 = vpop.permute.xlu0 %470 }
 0x21f   :  { %v465_v5 = vpop.permute.xlu2 %464 }
 0x228   :  { %v1289_v50 = vpop.permute.xlu1 %1288 }
 0x229   :  { %v1290_v54 = vunpack.i.l.bf16 %v1289_v50  ;;  %v1291_v58 = vunpack.i.h.bf16 %v1289_v50 }
 0x22b   :  { %v490_v55 = vsel %vm489_vm9, %v1689_v20, %v1290_v54  ;;  %v494_v56 = vsel %vm493_vm10, %v1290_v54, %v1285_v52  ;;  %v495_v2 = vsel %vm493_vm10, %v1291_v58, %v1286_v60  ;;  %v483_v20 = vpop.permute.xlu0 %482  ;;  %v491_v3 = vsel %vm489_vm9, %v1754_v61, %v1291_v58 }
 0x22c   :  { %640 = vmatmul.f32.vlgmr.msrb.gmra.mxu0 %v490_v55  ;;  %v498_v57 = vsel %vm497_vm11, %v494_v56, %v471_v53  ;;  %v499_v4 = vsel %vm497_vm11, %v495_v2, %v473_v59  ;;  %v503_v7 = vsel %vm501_vm13, %v473_v59, %v483_v20 }
 0x22d   :  { %666 = vmatmul.f32.vlgmr.msrb.gmra.mxu2 %v498_v57 }
 0x230   :  { %v481_v62 = vpop.permute.xlu1 %480 }
 0x231   :  { %1260 = vmatmul.msk.f32.vlgmr.msra.gmra.mxu3 %vm611_vm12, %v481_v62  ;;  %v502_v1 = vsel %vm501_vm13, %v471_v53, %v481_v62 }
 0x232   :  { %692 = vmatmul.f32.vlgmr.msra.gmra.mxu1 %v502_v1 }
 0x234   :  { %643 = vmatmul.f32.gmra.mxu0 %v491_v3 }
 0x235   :  { %669 = vmatmul.f32.gmra.mxu2 %v499_v4  ;;  %v475_v8 = vpop.permute.xlu0 %474 }
 0x238   :  { %v455_v0 = vpop.permute.xlu1 %454 }
 0x239   :  { %v496_v6 = vsel %vm493_vm10, %v455_v0, %v465_v5  ;;  %1261 = vmatmul.msk.f32.gmra.mxu3 %vm611_vm12, %v483_v20  ;;  %v492_v10 = vsel %vm489_vm9, %v403_v48, %v455_v0 }
 0x23a   :  { %695 = vmatmul.f32.gmra.mxu1 %v503_v7  ;;  %v500_v61 = vsel %vm497_vm11, %v496_v6, %v475_v8 }
 0x23c   :  { %646 = vmatmul.f32.gmra.mxu0 %v492_v10 }
 0x23d   :  { %672 = vmatmul.f32.gmra.mxu2 %v500_v61 }
 0x240   :  { %v485_v11 = vpop.permute.xlu1 %484 }
 0x241   :  { %1262 = vmatmul.msk.f32.gmra.mxu3 %vm611_vm12, %v485_v11  ;;  %v504_v63 = vsel %vm501_vm13, %v475_v8, %v485_v11 }
 0x242   :  { %698 = vmatmul.f32.gmra.mxu1 %v504_v63 }
 0x244   :  { %744 = vmatmul.f32.vlgmr.msra.gmra.mxu0 %v490_v55 }
 0x245   :  { %770 = vmatmul.f32.vlgmr.msra.gmra.mxu2 %v498_v57 }
 0x249   :  { %1264 = vmatmul.msk.f32.vlgmr.msrb.gmra.mxu3 %vm611_vm12, %v481_v62 }
 0x24a   :  { %796 = vmatmul.f32.vlgmr.msrb.gmra.mxu1 %v502_v1 }
 0x24c   :  { %747 = vmatmul.f32.gmra.mxu0 %v491_v3 }
 0x24d   :  { %773 = vmatmul.f32.gmra.mxu2 %v499_v4 }
 0x251   :  { %1265 = vmatmul.msk.f32.gmra.mxu3 %vm611_vm12, %v483_v20 }
 0x252   :  { %799 = vmatmul.f32.gmra.mxu1 %v503_v7 }
 0x254   :  { %750 = vmatmul.f32.gmra.mxu0 %v492_v10 }
 0x255   :  { %776 = vmatmul.f32.gmra.mxu2 %v500_v61 }
 0x259   :  { %1266 = vmatmul.msk.f32.gmra.mxu3 %vm611_vm12, %v485_v11 }
 0x25a   :  { %802 = vmatmul.f32.gmra.mxu1 %v504_v63 }
 0x2a9   :  { %v641_v29 = vpop.f32.mrf.mxu0 }
 0x2af   :  { %v693_v48 = vpop.f32.mrf.mxu1 }
 0x2b0   :  { %v667_v12 = vpop.f32.mrf.mxu2 }
 0x2b1   :  { %v668_v9 = vadd.f32 %v667_v12, %v641_v29  ;;  %v644_v13 = vpop.f32.mrf.mxu0 }
 0x2b3   :  { %v694_v14 = vadd.f32 %v693_v48, %v668_v9  ;;  %v1021_v9 = vld [vmem:[%s2394_s5 + $0x78] sm:$0xff] }
 0x2b4   :  { %v719_v15 = vpop.f32.mrf.mxu3  ;;  %1063 = vmatpush.msrb.mxu0 %v1021_v9 }
 0x2b5   :  { %v720_v16 = vadd.f32 %v719_v15, %v694_v14 }
 0x2b7   :  { %v696_v17 = vpop.f32.mrf.mxu1  ;;  %835 = vrot.lane.b32.xlu1 %v720_v16, %s1328_s3 }
 0x2b8   :  { %v670_v18 = vpop.f32.mrf.mxu2 }
 0x2b9   :  { %v671_v19 = vadd.f32 %v670_v18, %v644_v13  ;;  %v647_v21 = vpop.f32.mrf.mxu0  ;;  %v1020_v13 = vld [vmem:[%s2394_s5 + $0x70] sm:$0xff] }
 0x2ba   :  { %1064 = vmatpush.msrb.mxu0 %v1020_v13  ;;  %v1055_v13 = vld [vmem:[%s2394_s5 + $0x188] sm:$0xff] }
 0x2bb   :  { %v697_v22 = vadd.f32 %v696_v17, %v671_v19  ;;  %v1019_v17 = vld [vmem:[%s2394_s5 + $0x68] sm:$0xff] }
 0x2bc   :  { %v722_v23 = vpop.f32.mrf.mxu3  ;;  %1065 = vmatpush.msrb.mxu0 %v1019_v17 }
 0x2bd   :  { %v723_v24 = vadd.f32 %v722_v23, %v697_v22  ;;  %v1018_v22 = vld [vmem:[%s2394_s5 + $0x60] sm:$0xff] }
 0x2be   :  { %1066 = vmatpush.msrb.mxu0 %v1018_v22 }
 0x2bf   :  { %v699_v25 = vpop.f32.mrf.mxu1  ;;  %837 = vrot.lane.b32.xlu2 %v723_v24, %s1328_s3 }
 0x2c0   :  { %v673_v26 = vpop.f32.mrf.mxu2 }
 0x2c1   :  { %v674_v27 = vadd.f32 %v673_v26, %v647_v21  ;;  %v745_v30 = vpop.f32.mrf.mxu0 }
 0x2c3   :  { %v700_v28 = vadd.f32 %v699_v25, %v674_v27  ;;  %v1017_v27 = vld [vmem:[%s2394_s5 + $0x58] sm:$0xff] }
 0x2c4   :  { %v725_v31 = vpop.f32.mrf.mxu3  ;;  %1067 = vmatpush.msrb.mxu0 %v1017_v27  ;;  %v1040_v27 = vld [vmem:[%s2394_s5 + $0x110] sm:$0xff] }
 0x2c5   :  { %v726_v32 = vadd.f32 %v725_v31, %v700_v28 }
 0x2c7   :  { %v797_v33 = vpop.f32.mrf.mxu1  ;;  %839 = vrot.lane.b32.xlu0 %v726_v32, %s1328_s3 }
 0x2c8   :  { %v771_v34 = vpop.f32.mrf.mxu2 }
 0x2c9   :  { %v772_v35 = vadd.f32 %v771_v34, %v745_v30  ;;  %v748_v39 = vpop.f32.mrf.mxu0  ;;  %v1016_v30 = vld [vmem:[%s2394_s5 + $0x50] sm:$0xff] }
 0x2ca   :  { %1068 = vmatpush.msrb.mxu0 %v1016_v30  ;;  %v1039_v30 = vld [vmem:[%s2394_s5 + $0x108] sm:$0xff] }
 0x2cb   :  { %v798_v36 = vadd.f32 %v797_v33, %v772_v35  ;;  %v1014_v33 = vld [vmem:[%s2394_s5 + $0x40] sm:$0xff] }
 0x2cc   :  { %v823_v37 = vpop.f32.mrf.mxu3 }
 0x2cd   :  { %v824_v38 = vadd.f32 %v823_v37, %v798_v36 }
 0x2cf   :  { %850 = vrot.lane.b32.xlu1 %v824_v38, %s1328_s3  ;;  %v800_v40 = vpop.f32.mrf.mxu1 }
 0x2d0   :  { %v774_v41 = vpop.f32.mrf.mxu2 }
 0x2d1   :  { %v775_v42 = vadd.f32 %v774_v41, %v748_v39  ;;  %v751_v46 = vpop.f32.mrf.mxu0 }
 0x2d3   :  { %v801_v43 = vadd.f32 %v800_v40, %v775_v42 }
 0x2d4   :  { %v826_v44 = vpop.f32.mrf.mxu3 }
 0x2d5   :  { %v827_v45 = vadd.f32 %v826_v44, %v801_v43 }
 0x2d7   :  { %852 = vrot.lane.b32.xlu2 %v827_v45, %s1328_s3  ;;  %v803_v50 = vpop.f32.mrf.mxu1 }
 0x2d8   :  { %v777_v47 = vpop.f32.mrf.mxu2 }
 0x2d9   :  { %v778_v49 = vadd.f32 %v777_v47, %v751_v46  ;;  %v1012_v46 = vld [vmem:[%s2394_s5 + $0x30] sm:$0xff]  ;;  %v1011_v47 = vld [vmem:[%s2394_s5 + $0x28] sm:$0xff] }
 0x2db   :  { %v804_v51 = vadd.f32 %v803_v50, %v778_v49  ;;  %v1010_v49 = vld [vmem:[%s2394_s5 + $0x20] sm:$0xff]  ;;  %v1009_v50 = vld [vmem:[%s2394_s5 + $0x18] sm:$0xff] }
 0x2dc   :  { %v829_v52 = vpop.f32.mrf.mxu3 }
 0x2dd   :  { %v830_v53 = vadd.f32 %v829_v52, %v804_v51  ;;  %v1008_v51 = vld [vmem:[%s2394_s5 + $0x10] sm:$0xff]  ;;  %v1007_v52 = vld [vmem:[%s2394_s5 + $0x8] sm:$0xff] }
 0x2df   :  { %854 = vrot.lane.b32.xlu0 %v830_v53, %s1328_s3 }
 0x319   :  { %v838_v54 = vpop.permute.xlu2 %837 }
 0x31a   :  { %v845_v55 = vmax.f32 %v723_v24, %v838_v54  ;;  %v1037_v54 = vld [vmem:[%s2394_s5 + $0xf8] sm:$0xff] }
 0x31b   :  { %1083 = vmatpush.msrb.mxu2 %v1037_v54 }
 0x31c   :  { %876 = vrot.lane.b32.xlu1 %v845_v55, %s1329_s13 }
 0x324   :  { %885 = vrot.lane.b32.xlu1 %v845_v55, %s1325_s1 }
 0x329   :  { %v836_v56 = vpop.permute.xlu1 %835 }
 0x32a   :  { %v844_v57 = vmax.f32 %v720_v16, %v836_v56  ;;  %v1036_v56 = vld [vmem:[%s2394_s5 + $0xf0] sm:$0xff] }
 0x32b   :  { %1084 = vmatpush.msrb.mxu2 %v1036_v56 }
 0x32c   :  { %865 = vrot.lane.b32.xlu2 %v844_v57, %s1328_s3 }
 0x331   :  { %v853_v58 = vpop.permute.xlu2 %852 }
 0x332   :  { %v860_v59 = vmax.f32 %v827_v45, %v853_v58  ;;  %v1013_v45 = vld [vmem:[%s2394_s5 + $0x38] sm:$0xff]  ;;  %v1035_v58 = vld [vmem:[%s2394_s5 + $0xe8] sm:$0xff] }
 0x333   :  { %1085 = vmatpush.msrb.mxu2 %v1035_v58 }
 0x334   :  { %897 = vrot.lane.b32.xlu1 %v860_v59, %s1330_s14  ;;  %874 = vrot.lane.b32.xlu2 %v844_v57, %s1329_s13  ;;  %v1051_v59 = vld [vmem:[%s2394_s5 + $0x168] sm:$0xff] }
 0x339   :  { %v840_v60 = vpop.permute.xlu0 %839 }
 0x33a   :  { %v846_v62 = vmax.f32 %v726_v32, %v840_v60  ;;  %v1015_v32 = vld [vmem:[%s2394_s5 + $0x48] sm:$0xff]  ;;  %v1034_v60 = vld [vmem:[%s2394_s5 + $0xe0] sm:$0xff] }
 0x33b   :  { %1069 = vmatpush.msrb.mxu0 %v1015_v32  ;;  %1086 = vmatpush.msrb.mxu2 %v1034_v60  ;;  %v1038_v32 = vld [vmem:[%s2394_s5 + $0x100] sm:$0xff] }
 0x33c   :  { %869 = vrot.lane.b32.xlu0 %v846_v62, %s1328_s3  ;;  %867 = vrot.lane.b32.xlu2 %v845_v55, %s1328_s3 }
 0x33d   :  { %1070 = vmatpush.msrb.mxu0 %v1014_v33 }
 0x33f   :  { %1071 = vmatpush.msrb.mxu0 %v1013_v45 }
 0x341   :  { %v851_v1 = vpop.permute.xlu1 %850  ;;  %1072 = vmatpush.msrb.mxu0 %v1012_v46 }
 0x342   :  { %v859_v2 = vmax.f32 %v824_v38, %v851_v1  ;;  %v1033_v1 = vld [vmem:[%s2394_s5 + $0xd8] sm:$0xff] }
 0x343   :  { %1073 = vmatpush.msrb.mxu0 %v1011_v47  ;;  %1087 = vmatpush.msrb.mxu2 %v1033_v1  ;;  %v1157_v1 = vld [vmem:[%s2396_s7 + $0x68] sm:$0xff] }
 0x344   :  { %878 = vrot.lane.b32.xlu0 %v846_v62, %s1329_s13  ;;  %883 = vrot.lane.b32.xlu2 %v844_v57, %s1325_s1 }
 0x345   :  { %895 = vrot.lane.b32.xlu1 %v859_v2, %s1330_s14  ;;  %1074 = vmatpush.msrb.mxu0 %v1010_v49  ;;  %v1049_v2 = vld [vmem:[%s2394_s5 + $0x158] sm:$0xff] }
 0x347   :  { %1075 = vmatpush.msrb.mxu0 %v1009_v50 }
 0x349   :  { %1076 = vmatpush.msrb.mxu0 %v1008_v51 }
 0x34b   :  { %1077 = vmatpush.msrb.mxu0 %v1007_v52 }
 0x34c   :  { %887 = vrot.lane.b32.xlu0 %v846_v62, %s1325_s1 }
 0x351   :  { %v855_v20 = vpop.permute.xlu0 %854 }
 0x352   :  { %v861_v3 = vmax.f32 %v830_v53, %v855_v20  ;;  %v1006_v53 = vld [vmem:[%s2394_s5] sm:$0xff] }
 0x353   :  { %1078 = vmatpush.msrb.mxu0 %v1006_v53 }
 0x354   :  { %899 = vrot.lane.b32.xlu0 %v861_v3, %s1330_s14  ;;  %v1032_v3 = vld [vmem:[%s2394_s5 + $0xd0] sm:$0xff] }
 0x355   :  { %1088 = vmatpush.msrb.mxu2 %v1032_v3  ;;  %1137 = vmatpush.msra.mxu0 %v1055_v13  ;;  %v1154_v3 = vld [vmem:[%s2396_s7 + $0x50] sm:$0xff] }
 0x356   :  { %v1194_v13 = vld [vmem:[%s2398_s9 + $0x30] sm:$0xff] }
 0x386   :  { %v866_v4 = vpop.permute.xlu2 %865 }
 0x387   :  { %v905_v63 = vsel %vm904_vm14, %v844_v57, %v866_v4  ;;  %v1052_v57 = vld [vmem:[%s2394_s5 + $0x170] sm:$0xff] }
 0x388   :  { %v1048_v4 = vld [vmem:[%s2394_s5 + $0x150] sm:$0xff] }
 0x38e   :  { %v877_v5 = vpop.permute.xlu1 %876  ;;  %v875_v0 = vpop.permute.xlu2 %874 }
 0x38f   :  { %v909_v29 = vsel %vm908_vm15, %v905_v63, %v875_v0  ;;  %v1047_v0 = vld [vmem:[%s2394_s5 + $0x148] sm:$0xff] }
 0x396   :  { %v886_v6 = vpop.permute.xlu1 %885  ;;  %v868_v7 = vpop.permute.xlu2 %867 }
 0x397   :  { %v906_v61 = vsel %vm904_vm14, %v845_v55, %v868_v7  ;;  %v1053_v55 = vld [vmem:[%s2394_s5 + $0x178] sm:$0xff]  ;;  %v1046_v7 = vld [vmem:[%s2394_s5 + $0x140] sm:$0xff] }
 0x398   :  { %v910_v48 = vsel %vm908_vm15, %v906_v61, %v877_v5  ;;  %1103 = vmatpush.msra.mxu3 %v1053_v55  ;;  %v1031_v5 = vld [vmem:[%s2394_s5 + $0xc8] sm:$0xff]  ;;  %v2228_v61 = vld [vmem:[%s2393_s4] sm:$0xf] }
 0x399   :  { %v914_v18 = vsel %vm912_vm1, %v910_v48, %v886_v6  ;;  %v1030_v6 = vld [vmem:[%s2394_s5 + $0xc0] sm:$0xff]  ;;  %1089 = vmatpush.msrb.mxu2 %v1031_v5  ;;  %v990_v63 = vperm.slane %v2228_v61, 0  ;;  %v1028_v48 = vld [vmem:[%s2394_s5 + $0xb0] sm:$0xff]  ;;  %v991_v46 = vperm.slane %v2228_v61, 1  ;;  %v992_v47 = vperm.slane %v2228_v61, 2 }
 0x39a   :  { %1104 = vmatpush.msra.mxu3 %v1052_v57  ;;  %v1152_v5 = vld [vmem:[%s2396_s7 + $0x40] sm:$0xff] }
 0x39b   :  { %1090 = vmatpush.msrb.mxu2 %v1030_v6  ;;  %v1150_v6 = vld [vmem:[%s2396_s7 + $0x30] sm:$0xff] }
 0x39c   :  { %1105 = vmatpush.msra.mxu3 %v1051_v59 }
 0x39e   :  { %v884_v11 = vpop.permute.xlu2 %883 }
 0x39f   :  { %v913_v14 = vsel %vm912_vm1, %v909_v29, %v884_v11 }
 0x3a6   :  { %v898_v10 = vpop.permute.xlu1 %897 }
 0x3a7   :  { %v917_v21 = vsel %vm119_vm0, %v914_v18, %v898_v10  ;;  %v1045_v10 = vld [vmem:[%s2394_s5 + $0x138] sm:$0xff]  ;;  %v1054_v18 = vld [vmem:[%s2394_s5 + $0x180] sm:$0xff] }
 0x3a8   :  { %v924_v24 = vrot.slane %v917_v21, 1  ;;  %1138 = vmatpush.msra.mxu0 %v1054_v18 }
 0x3aa   :  { %v2124_v31 = vmax.f32 %v917_v21, %v924_v24  ;;  %v1042_v21 = vld [vmem:[%s2394_s5 + $0x120] sm:$0xff]  ;;  %v1041_v24 = vld [vmem:[%s2394_s5 + $0x118] sm:$0xff] }
 0x3ac   :  { %v957_v36 = vrot.slane %v2124_v31, 4  ;;  %v953_v37 = vrot.slane %v2124_v31, 2 }
 0x3ae   :  { %v870_v8 = vpop.permute.xlu0 %869 }
 0x3af   :  { %v907_v34 = vsel %vm904_vm14, %v846_v62, %v870_v8  ;;  %v1050_v62 = vld [vmem:[%s2394_s5 + $0x160] sm:$0xff]  ;;  %v1029_v8 = vld [vmem:[%s2394_s5 + $0xb8] sm:$0xff] }
 0x3b0   :  { %1106 = vmatpush.msra.mxu3 %v1050_v62  ;;  %1091 = vmatpush.msrb.mxu2 %v1029_v8  ;;  %v1158_v62 = vld [vmem:[%s2396_s7 + $0x70] sm:$0xff]  ;;  %v1148_v8 = vld [vmem:[%s2396_s7 + $0x20] sm:$0xff] }
 0x3b1   :  { %1168 = vmatpush.msra.mxu1 %v1158_v62 }
 0x3b2   :  { %1107 = vmatpush.msra.mxu3 %v1049_v2  ;;  %1092 = vmatpush.msrb.mxu2 %v1028_v48  ;;  %v1156_v2 = vld [vmem:[%s2396_s7 + $0x60] sm:$0xff]  ;;  %v1197_v48 = vld [vmem:[%s2398_s9 + $0x48] sm:$0xff] }
 0x3b3   :  { %1169 = vmatpush.msra.mxu1 %v1157_v1 }
 0x3b4   :  { %1108 = vmatpush.msra.mxu3 %v1048_v4  ;;  %v1153_v4 = vld [vmem:[%s2396_s7 + $0x48] sm:$0xff] }
 0x3b5   :  { %1170 = vmatpush.msra.mxu1 %v1156_v2 }
 0x3b6   :  { %v879_v12 = vpop.permute.xlu0 %878  ;;  %1109 = vmatpush.msra.mxu3 %v1047_v0  ;;  %v1151_v0 = vld [vmem:[%s2396_s7 + $0x38] sm:$0xff] }
 0x3b7   :  { %v896_v15 = vpop.permute.xlu1 %895  ;;  %v911_v35 = vsel %vm908_vm15, %v907_v34, %v879_v12  ;;  %v1044_v12 = vld [vmem:[%s2394_s5 + $0x130] sm:$0xff] }
 0x3b8   :  { %v916_v16 = vsel %vm119_vm0, %v913_v14, %v896_v15  ;;  %1110 = vmatpush.msra.mxu3 %v1046_v7  ;;  %v1027_v15 = vld [vmem:[%s2394_s5 + $0xa8] sm:$0xff] }
 0x3b9   :  { %v920_v19 = vrot.slane %v916_v16, 1  ;;  %1093 = vmatpush.msrb.mxu2 %v1027_v15  ;;  %v1149_v7 = vld [vmem:[%s2396_s7 + $0x28] sm:$0xff]  ;;  %v1192_v15 = vld [vmem:[%s2398_s9 + $0x20] sm:$0xff] }
 0x3ba   :  { %1111 = vmatpush.msra.mxu3 %v1045_v10  ;;  %v1147_v10 = vld [vmem:[%s2396_s7 + $0x18] sm:$0xff] }
 0x3bb   :  { %v2113_v23 = vmax.f32 %v916_v16, %v920_v19  ;;  %v1043_v16 = vld [vmem:[%s2394_s5 + $0x128] sm:$0xff]  ;;  %v1026_v19 = vld [vmem:[%s2394_s5 + $0xa0] sm:$0xff] }
 0x3bc   :  { %1112 = vmatpush.msra.mxu3 %v1044_v12  ;;  %1094 = vmatpush.msrb.mxu2 %v1026_v19  ;;  %v1196_v12 = vld [vmem:[%s2398_s9 + $0x40] sm:$0xff] }
 0x3bd   :  { %v932_v25 = vrot.slane %v2113_v23, 4  ;;  %v928_v26 = vrot.slane %v2113_v23, 2  ;;  %v936_v44 = vrot.slane %v2113_v23, 6 }
 0x3be   :  { %v888_v28 = vpop.permute.xlu0 %887  ;;  %1113 = vmatpush.msra.mxu3 %v1043_v16  ;;  %v1191_v16 = vld [vmem:[%s2398_s9 + $0x18] sm:$0xff] }
 0x3bf   :  { %933 = vrot.lane.b32.xlu0 %v932_v25, %s1331_s24  ;;  %929 = vrot.lane.b32.xlu2 %v928_v26, %s1325_s1  ;;  %v915_v38 = vsel %vm912_vm1, %v911_v35, %v888_v28  ;;  %v1024_v26 = vld [vmem:[%s2394_s5 + $0x90] sm:$0xff]  ;;  %v1023_v28 = vld [vmem:[%s2394_s5 + $0x88] sm:$0xff] }
 0x3c0   :  { %1114 = vmatpush.msra.mxu3 %v1042_v21 }
 0x3c2   :  { %1115 = vmatpush.msra.mxu3 %v1041_v24 }
 0x3c4   :  { %1116 = vmatpush.msra.mxu3 %v1040_v27 }
 0x3c6   :  { %v900_v39 = vpop.permute.xlu0 %899  ;;  %1117 = vmatpush.msra.mxu3 %v1039_v30  ;;  %v1189_v30 = vld [vmem:[%s2398_s9 + $0x8] sm:$0xff] }
 0x3c7   :  { %v918_v40 = vsel %vm119_vm0, %v915_v38, %v900_v39  ;;  %958 = vrot.lane.b32.xlu0 %v957_v36, %s1331_s24  ;;  %954 = vrot.lane.b32.xlu2 %v953_v37, %s1325_s1  ;;  %v993_v36 = vperm.slane %v2228_v61, 3  ;;  %v1146_v61 = vld [vmem:[%s2396_s7 + $0x10] sm:$0xff] }
 0x3c8   :  { %v950_v41 = vrot.slane %v918_v40, 1  ;;  %1118 = vmatpush.msra.mxu3 %v1038_v32  ;;  %v1294_v32 = vld [vmem:[%s2397_s8] ss:$0 sm:$0xff] }
 0x3ca   :  { %v952_v42 = vmax.f32 %v918_v40, %v950_v41 }
 0x3cc   :  { %v962_v43 = vrot.slane %v952_v42, 6 }
 0x3ce   :  { %963 = vrot.lane.b32.xlu1 %v962_v43, %s1328_s3 }
 0x3cf   :  { %941 = vrot.lane.b32.xlu0 %v2124_v31, %s1330_s14  ;;  %966 = vrot.lane.b32.xlu2 %v952_v42, %s1330_s14 }
 0x3d6   :  { %937 = vrot.lane.b32.xlu1 %v936_v44, %s1328_s3 }
 0x419   :  { %v2199_v20 = vpop.permute.xlu2 %929 }
 0x41a   :  { %v944_v14 = vsel %vm501_vm13, %v2113_v23, %v2199_v20  ;;  %v1025_v23 = vld [vmem:[%s2394_s5 + $0x98] sm:$0xff] }
 0x41b   :  { %1095 = vmatpush.msrb.mxu2 %v1025_v23 }
 0x41d   :  { %1096 = vmatpush.msrb.mxu2 %v1024_v26 }
 0x41f   :  { %1097 = vmatpush.msrb.mxu2 %v1023_v28  ;;  %v1190_v28 = vld [vmem:[%s2398_s9 + $0x10] sm:$0xff] }
 0x421   :  { %v955_v11 = vpop.permute.xlu2 %954 }
 0x422   :  { %v969_v29 = vsel %vm501_vm13, %v2124_v31, %v955_v11  ;;  %v1022_v31 = vld [vmem:[%s2394_s5 + $0x80] sm:$0xff] }
 0x423   :  { %v976_v9 = vrot.slane %v969_v29, 1  ;;  %1098 = vmatpush.msrb.mxu2 %v1022_v31  ;;  %v1198_v29 = vld [vmem:[%s2398_s9 + $0x50] sm:$0xf]  ;;  %v1188_v31 = vld [vmem:[%s2398_s9] sm:$0xff] }
 0x425   :  { %v984_v17 = vsel %vm439_vm8, %v944_v14, %v976_v9  ;;  %1269 = vmatpush.msk.msra.mxu2 %vm401_vm7, %v1198_v29  ;;  %v1195_v9 = vld [vmem:[%s2398_s9 + $0x38] sm:$0xff]  ;;  %v1193_v14 = vld [vmem:[%s2398_s9 + $0x28] sm:$0xff]  ;;  %s1238_s9 = sshll.u32 %s2400_s11, 4  ;;  %s1239_s9 = int_to_ptr.hbm [resolvable:$true] %s1238_s9 }
 0x426   :  { %v998_v22 = vadd.f32 %v990_v63, %v984_v17  ;;  %v1144_v63 = vld [vmem:[%s2396_s7] sm:$0xff] }
 0x427   :  { %1215 = vmatpush.msra.mxu2 %v1197_v48  ;;  %v1293_v17 = vld [vmem:[%s2395_s6] ss:$0 sm:$0xff] }
 0x428   :  { %v1002_v25 = vmax.f32 %v998_v22, 0.0 }
 0x429   :  { %v967_v35 = vpop.permute.xlu2 %966  ;;  %1216 = vmatpush.msra.mxu2 %v1196_v12 }
 0x42a   :  { %1079 = vmatmul.f32.vlgmr.msrb.gmra.mxu0 %v1002_v25  ;;  %v979_v37 = vrot.slane %v967_v35, 1 }
 0x42b   :  { %1217 = vmatpush.msra.mxu2 %v1195_v9 }
 0x42d   :  { %1218 = vmatpush.msra.mxu2 %v1194_v13 }
 0x42f   :  { %1219 = vmatpush.msra.mxu2 %v1193_v14 }
 0x431   :  { %v934_v33 = vpop.permute.xlu0 %933  ;;  %1220 = vmatpush.msra.mxu2 %v1192_v15 }
 0x432   :  { %v945_v49 = vsel %vm908_vm15, %v2199_v20, %v934_v33  ;;  %v1155_v20 = vld [vmem:[%s2396_s7 + $0x58] sm:$0xff] }
 0x433   :  { %1171 = vmatpush.msra.mxu1 %v1155_v20  ;;  %1221 = vmatpush.msra.mxu2 %v1191_v16 }
 0x435   :  { %1172 = vmatpush.msra.mxu1 %v1154_v3  ;;  %1222 = vmatpush.msra.mxu2 %v1190_v28 }
 0x437   :  { %1173 = vmatpush.msra.mxu1 %v1153_v4  ;;  %1223 = vmatpush.msra.mxu2 %v1189_v30 }
 0x439   :  { %v959_v34 = vpop.permute.xlu0 %958  ;;  %1174 = vmatpush.msra.mxu1 %v1152_v5  ;;  %1224 = vmatpush.msra.mxu2 %v1188_v31 }
 0x43a   :  { %v970_v42 = vsel %vm908_vm15, %v955_v11, %v959_v34  ;;  %v1145_v11 = vld [vmem:[%s2396_s7 + $0x8] sm:$0xff] }
 0x43b   :  { %1175 = vmatpush.msra.mxu1 %v1151_v0 }
 0x43d   :  { %1176 = vmatpush.msra.mxu1 %v1150_v6 }
 0x43f   :  { %1177 = vmatpush.msra.mxu1 %v1149_v7 }
 0x440   :  { %v964_v38 = vpop.permute.xlu1 %963 }
 0x441   :  { %v942_v39 = vpop.permute.xlu0 %941  ;;  %v971_v44 = vsel %vm946_vm2, %v970_v42, %v964_v38  ;;  %v972_v45 = vsel %vm119_vm0, %v964_v38, %v967_v35  ;;  %1178 = vmatpush.msra.mxu1 %v1148_v8 }
 0x442   :  { %v987_v40 = vsel %vm439_vm8, %v942_v39, %v979_v37  ;;  %v977_v50 = vrot.slane %v971_v44, 1  ;;  %v978_v51 = vrot.slane %v972_v45, 1 }
 0x443   :  { %v1001_v41 = vadd.f32 %v993_v36, %v987_v40  ;;  %1179 = vmatpush.msra.mxu1 %v1147_v10  ;;  %v1295_v36 = vld [vmem:[%s2399_s10] ss:$0 sm:$0xff] }
 0x445   :  { %v1005_v43 = vmax.f32 %v1001_v41, 0.0  ;;  %1180 = vmatpush.msra.mxu1 %v1146_v61 }
 0x447   :  { %1267 = vmatmul.msk.f32.vlgmr.msra.gmra.mxu0 %vm904_vm14, %v1005_v43  ;;  %1181 = vmatpush.msra.mxu1 %v1145_v11 }
 0x448   :  { %v938_v52 = vpop.permute.xlu1 %937 }
 0x449   :  { %v947_v53 = vsel %vm946_vm2, %v945_v49, %v938_v52  ;;  %v948_v54 = vsel %vm119_vm0, %v938_v52, %v942_v39  ;;  %1182 = vmatpush.msra.mxu1 %v1144_v63  ;;  %vm1163_vm0 = vcmask 982016  }
 0x44a   :  { %v985_v55 = vsel %vm439_vm8, %v947_v53, %v977_v50  ;;  %v986_v56 = vsel %vm439_vm8, %v948_v54, %v978_v51 }
 0x44b   :  { %v999_v57 = vadd.f32 %v991_v46, %v985_v55  ;;  %v1000_v58 = vadd.f32 %v992_v47, %v986_v56 }
 0x44d   :  { %v1003_v59 = vmax.f32 %v999_v57, 0.0  ;;  %v1004_v60 = vmax.f32 %v1000_v58, 0.0 }
 0x44f   :  { %1099 = vmatmul.f32.vlgmr.msrb.gmra.mxu2 %v1003_v59  ;;  %1119 = vmatmul.f32.vlgmr.msra.gmra.mxu3 %v1004_v60 }
 0x4a7   :  { %v1080_v18 = vpop.f32.mrf.mxu0 }
 0x4a8   :  { %v1081_v19 = vadd.f32 %v1293_v17, %v1080_v18 }
 0x4c4   :  { %v1140_v25 = vpop.f32.mrf.mxu0 }
 0x4d2   :  { %v1100_v21 = vpop.f32.mrf.mxu2  ;;  %v1120_v23 = vpop.f32.mrf.mxu3 }
 0x4d3   :  { %v1101_v22 = vadd.f32 %v1100_v21, %v1081_v19 }
 0x4d5   :  { %v1121_v24 = vadd.f32 %v1120_v23, %v1101_v22 }
 0x4d7   :  { %v1141_v26 = vadd.f32 %v1140_v25, %v1121_v24 }
 0x4d9   :  { %v1143_v27 = vmax.f32 %v1141_v26, 0.0 }
 0x4db   :  { %1268 = vmatmul.msk.f32.vlgmr.msra.gmra.mxu1 %vm1163_vm0, %v1143_v27 }
 0x558   :  { %v1184_v33 = vpop.f32.mrf.mxu1 }
 0x559   :  { %v1185_v34 = vadd.f32 %v1294_v32, %v1184_v33 }
 0x55b   :  { %v1187_v35 = vmax.f32 %v1185_v34, 0.0 }
 0x55d   :  { %1270 = vmatmul.msk.f32.vlgmr.msra.gmra.mxu2 %vm489_vm9, %v1187_v35 }
 0x5e0   :  { %v1226_v37 = vpop.f32.mrf.mxu2 }
 0x5e1   :  { %v1227_v38 = vadd.f32 %v1295_v36, %v1226_v37 }
 0x5e3   :  { %1230 = vst.msk [vmem:[#allocation2] sm:$0x3] %vm1229_vm3, %v1227_v38 }
 0x5e4   :  { %1241 = dma.vmem_to_hbm [thread:$0]  %s1237_s28, 32, %s1239_s9, [#allocation3]  }
 0x5e5   :  { %1320 = dma.done.wait [#allocation3], 32  }
 0x5e6   :  { %1321 = vsyncadd [#allocation3], 4294967264 }
 0x5e7   :  { %1246 = vsyncpa [#allocation3], 1 }

</bundles_post_ra>
